<compile_context>
chip_gen: v7x
topology: tpu7x:2x2x1
jax: 0.10.0
libtpu: 0.0.40
codegen_flags: <defaults>
</compile_context>

<pallas_src>
import functools

import jax
import jax.numpy as jnp
from jax.experimental import pallas as pl
from jax.experimental.pallas import tpu as pltpu


_LANE = 128
_SUBLANE = 8
_MAX_TM_CONV = 1024                    # conv K<=2048, N=128: <=4 MiB bf16 x-tile
_MAX_TM_FC = 512                       # fc-head K can be ~6272: keep v7x VMEM safe
_VMEM_LIMIT_BYTES = 48 * 1024 * 1024   # fits v7x (64 MiB physical) and below


def _round_up(x, m):
    return (x + m - 1) // m * m


def _cdiv(a, b):
    return -(-a // b)


def _conv_out(h, k, s):
    return (h - k) // s + 1


def _m_tiling(m, max_tm):
    """Balanced row tiling: padding is at most a few rows per tile, and the
    tile count is rounded to an even number whenever more than one tile is
    needed (so the 'parallel' axis shards across both v7x TensorCores)."""
    nt = _cdiv(m, max_tm)
    if nt > 1 and nt % 2:
        nt += 1
    tm = _round_up(_cdiv(m, nt), _SUBLANE)
    return tm, nt * tm


# ----------------------------------------------------------------------------
# Pallas kernels
# ----------------------------------------------------------------------------
def _matmul_bias_act_kernel(x_ref, w_ref, b_ref, o_ref, *, relu):
    """o = relu?(x @ w + b); bf16 operands, f32 accumulate, f32 epilogue."""
    acc = jnp.dot(x_ref[...], w_ref[...], preferred_element_type=jnp.float32)
    acc = acc + b_ref[...]                         # (TM, N) + (1, N) broadcast
    if relu:
        acc = jnp.maximum(acc, 0.0)
    o_ref[...] = acc.astype(o_ref.dtype)


def _fc_head_kernel(x_ref, w1_ref, b1_ref, w2_ref, b2_ref, o_ref):
    """Fused fc1 (+ReLU) and fc2: the 512-wide hidden never leaves VMEM."""
    h = jnp.dot(x_ref[...], w1_ref[...], preferred_element_type=jnp.float32)
    h = jnp.maximum(h + b1_ref[...], 0.0)
    q = jnp.dot(h.astype(w2_ref.dtype), w2_ref[...],
                preferred_element_type=jnp.float32)
    o_ref[...] = (q + b2_ref[...]).astype(o_ref.dtype)


def _compiler_params():
    return pltpu.CompilerParams(
        dimension_semantics=("parallel",),          # row tiles are independent
        vmem_limit_bytes=_VMEM_LIMIT_BYTES,
    )


def pallas_matmul_bias_act(x, w, b, *, relu, out_dtype):
    """x: (M, K) bf16, w: (K, Npad) bf16, b: (1, Npad) f32 -> (M, Npad)."""
    m, k = x.shape
    n = w.shape[1]
    tm, m_pad = _m_tiling(m, _MAX_TM_CONV)
    if m_pad != m:
        x = jnp.pad(x, ((0, m_pad - m), (0, 0)))
    out = pl.pallas_call(
        functools.partial(_matmul_bias_act_kernel, relu=relu),
        out_shape=jax.ShapeDtypeStruct((m_pad, n), out_dtype),
        grid=(m_pad // tm,),
        in_specs=[
            # Streamed row tile.  (Only add pipeline_mode=pl.Buffered(3) here
            # if a trace shows exposed DMA on this operand.)
            pl.BlockSpec((tm, k), lambda i: (i, 0)),
            pl.BlockSpec((k, n), lambda i: (0, 0)),    # resident weight
            pl.BlockSpec((1, n), lambda i: (0, 0)),    # resident bias
        ],
        out_specs=pl.BlockSpec((tm, n), lambda i: (i, 0)),
        compiler_params=_compiler_params(),
    )(x, w, b)
    return out[:m] if m_pad != m else out


def pallas_fc_head(x, w1, b1, w2, b2):
    """Fused fc1+ReLU+fc2.  x: (M, K) bf16 -> (M, Npad) f32."""
    m, k = x.shape
    h = w1.shape[1]
    n = w2.shape[1]
    tm, m_pad = _m_tiling(m, _MAX_TM_FC)
    if m_pad != m:
        x = jnp.pad(x, ((0, m_pad - m), (0, 0)))
    out = pl.pallas_call(
        _fc_head_kernel,
        out_shape=jax.ShapeDtypeStruct((m_pad, n), jnp.float32),
        grid=(m_pad // tm,),
        in_specs=[
            pl.BlockSpec((tm, k), lambda i: (i, 0)),
            pl.BlockSpec((k, h), lambda i: (0, 0)),
            pl.BlockSpec((1, h), lambda i: (0, 0)),
            pl.BlockSpec((h, n), lambda i: (0, 0)),
            pl.BlockSpec((1, n), lambda i: (0, 0)),
        ],
        out_specs=pl.BlockSpec((tm, n), lambda i: (i, 0)),
        compiler_params=_compiler_params(),
    )(x, w1, b1, w2, b2)
    return out[:m] if m_pad != m else out


# ----------------------------------------------------------------------------
# im2col glue (plain JAX, NHWC): (N,H,W,C) -> (N*OH*OW, KH*KW*C)
# TODO(synk): replace with in-kernel patch extraction (see module docstring).
# ----------------------------------------------------------------------------
def im2col_nhwc(x, kh, kw, stride):
    n, h, w, c = x.shape
    oh = _conv_out(h, kh, stride)
    ow = _conv_out(w, kw, stride)
    cols = []
    for i in range(kh):
        for j in range(kw):
            cols.append(x[:, i:i + stride * oh:stride,
                          j:j + stride * ow:stride, :])
    p = jnp.stack(cols, axis=3)                    # (n, oh, ow, kh*kw, c)
    return p.reshape(n * oh * ow, kh * kw * c), oh, ow


# ----------------------------------------------------------------------------
# Parameters: PyTorch-style init + one-time packing for the TPU kernels
# ----------------------------------------------------------------------------
def init_dqn_params(key, input_shape, num_actions):
    c, h, w = input_shape
    h1, w1 = _conv_out(h, 8, 4), _conv_out(w, 8, 4)
    h2, w2 = _conv_out(h1, 4, 2), _conv_out(w1, 4, 2)
    h3, w3 = _conv_out(h2, 3, 1), _conv_out(w2, 3, 1)
    feat = 64 * h3 * w3

    def uniform(key, shape, fan_in):
        bound = 1.0 / jnp.sqrt(fan_in)
        return jax.random.uniform(key, shape, jnp.float32, -bound, bound)

    keys = jax.random.split(key, 10)
    return {
        "conv1_w": uniform(keys[0], (32, c, 8, 8), c * 8 * 8),
        "conv1_b": uniform(keys[1], (32,), c * 8 * 8),
        "conv2_w": uniform(keys[2], (64, 32, 4, 4), 32 * 4 * 4),
        "conv2_b": uniform(keys[3], (64,), 32 * 4 * 4),
        "conv3_w": uniform(keys[4], (64, 64, 3, 3), 64 * 3 * 3),
        "conv3_b": uniform(keys[5], (64,), 64 * 3 * 3),
        "fc1_w": uniform(keys[6], (512, feat), feat),
        "fc1_b": uniform(keys[7], (512,), feat),
        "fc2_w": uniform(keys[8], (num_actions, 512), 512),
        "fc2_b": uniform(keys[9], (num_actions,), 512),
    }


def pack_params(params, input_shape):
    """One-time pack (eager, outside the jitted forward):
      * conv weights -> (KH*KW*ICact, OCpad) bf16, where ICact is the
        lane-padded channel count of the incoming activation (128 for conv2
        and conv3) and the rows for padded input channels are zero — this is
        what makes carrying the 128-padded activations forward exact.
      * fc1 columns permuted once so the padded NHWC flatten matches PyTorch's
        NCHW .view(N, -1) semantics, with zero rows for the padded channels.
      * fc2 transposed and lane-padded to a multiple of 128."""
    c, h, w = input_shape
    h1, w1 = _conv_out(h, 8, 4), _conv_out(w, 8, 4)
    h2, w2 = _conv_out(h1, 4, 2), _conv_out(w1, 4, 2)
    h3, w3 = _conv_out(h2, 3, 1), _conv_out(w2, 3, 1)

    def pack_conv(wgt, bias, ic_act):
        oc, ic, kh, kw = wgt.shape
        ocp = _round_up(oc, _LANE)
        wm = jnp.transpose(wgt, (2, 3, 1, 0))                      # (kh,kw,ic,oc)
        wm = jnp.pad(wm, ((0, 0), (0, 0), (0, ic_act - ic), (0, ocp - oc)))
        wm = wm.reshape(kh * kw * ic_act, ocp).astype(jnp.bfloat16)
        bm = jnp.pad(bias, (0, ocp - oc)).astype(jnp.float32).reshape(1, ocp)
        return wm, bm

    c1_ocp = _round_up(32, _LANE)          # conv1 output channels after padding
    c2_ocp = _round_up(64, _LANE)          # conv2 output channels after padding
    c3_ocp = _round_up(64, _LANE)          # conv3 output channels after padding

    c1w, c1b = pack_conv(params["conv1_w"], params["conv1_b"], c)
    c2w, c2b = pack_conv(params["conv2_w"], params["conv2_b"], c1_ocp)
    c3w, c3b = pack_conv(params["conv3_w"], params["conv3_b"], c2_ocp)

    # fc1: PyTorch flattens NCHW (c, h, w); our activations flatten padded
    # NHWC (h, w, 128) -> permute + zero-pad columns once here.
    fc1_w = params["fc1_w"].reshape(512, 64, h3, w3)
    fc1_w = jnp.transpose(fc1_w, (2, 3, 1, 0))                     # (h3,w3,64,512)
    fc1_w = jnp.pad(fc1_w, ((0, 0), (0, 0), (0, c3_ocp - 64), (0, 0)))
    fc1_w = fc1_w.reshape(h3 * w3 * c3_ocp, 512).astype(jnp.bfloat16)
    fc1_b = params["fc1_b"].astype(jnp.float32).reshape(1, 512)

    na = params["fc2_w"].shape[0]
    nap = _round_up(na, _LANE)
    fc2_w = jnp.pad(params["fc2_w"].T, ((0, 0), (0, nap - na))).astype(jnp.bfloat16)
    fc2_b = jnp.pad(params["fc2_b"], (0, nap - na)).astype(jnp.float32).reshape(1, nap)

    return {
        "conv1_w": c1w, "conv1_b": c1b,
        "conv2_w": c2w, "conv2_b": c2b,
        "conv3_w": c3w, "conv3_b": c3b,
        "fc1_w": fc1_w, "fc1_b": fc1_b,
        "fc2_w": fc2_w, "fc2_b": fc2_b,
    }


# ----------------------------------------------------------------------------
# Forward pass
# ----------------------------------------------------------------------------
_CONV_LAYERS = (("conv1", 8, 4), ("conv2", 4, 2), ("conv3", 3, 1))


def dqn_forward(packed, x, *, num_actions):
    """x: (N, C, H, W) float32 -> (N, num_actions) float32."""
    n = x.shape[0]
    # Single layout change: NCHW -> NHWC, bf16 for MXU-native matmuls.
    x = jnp.transpose(x, (0, 2, 3, 1)).astype(jnp.bfloat16)
    for name, k, s in _CONV_LAYERS:
        patches, oh, ow = im2col_nhwc(x, k, k, s)
        y = pallas_matmul_bias_act(patches, packed[name + "_w"],
                                   packed[name + "_b"],
                                   relu=True, out_dtype=jnp.bfloat16)
        # Lane-padded output channels are exactly zero (zero weight columns +
        # zero bias lanes); carry them into the next layer instead of an
        # unaligned crop copy — the next packed weight has zero rows for them.
        x = y.reshape(n, oh, ow, y.shape[-1])
    feats = x.reshape(n, -1)                      # padded NHWC flatten (matches fc1)
    q = pallas_fc_head(feats, packed["fc1_w"], packed["fc1_b"],
                       packed["fc2_w"], packed["fc2_b"])
    return q[:, :num_actions]


# ----------------------------------------------------------------------------
# Pure-JAX f32 reference (sanity check)
# ----------------------------------------------------------------------------
def dqn_reference(params, x):
    def conv(x, w, b, s):
        y = jax.lax.conv_general_dilated(
            x, w, window_strides=(s, s), padding="VALID",
            dimension_numbers=("NCHW", "OIHW", "NCHW"))
        return jax.nn.relu(y + b[None, :, None, None])

    n = x.shape[0]
    x = conv(x, params["conv1_w"], params["conv1_b"], 4)
    x = conv(x, params["conv2_w"], params["conv2_b"], 2)
    x = conv(x, params["conv3_w"], params["conv3_b"], 1)
    x = x.reshape(n, -1)
    x = jax.nn.relu(x @ params["fc1_w"].T + params["fc1_b"])
    return x @ params["fc2_w"].T + params["fc2_b"]


if __name__ == "__main__":
    # Small Atari-like problem: 4 stacked frames, 36x36 spatial, 6 actions.
    # (36 -> conv1 8/4 -> 8 -> conv2 4/2 -> 3 -> conv3 3/1 -> 1.)
    channels, spatial, num_actions = 4, 36, 6

    key = jax.random.PRNGKey(0)
    pkey, xkey = jax.random.split(key)
    params = init_dqn_params(pkey, (channels, spatial, spatial), num_actions)
    packed = pack_params(params, (channels, spatial, spatial))
    packed = jax.tree_util.tree_map(jax.block_until_ready, packed)

    fwd = jax.jit(functools.partial(dqn_forward, num_actions=num_actions))

    # batch=2 exercises the single-tile path; batch=20 makes conv1's M=1280
    # exceed the 1024-row tile cap and exercises the balanced / even-length
    # multi-tile grid path.
    for batch in (2, 20):
        x = jax.random.normal(jax.random.fold_in(xkey, batch),
                              (batch, channels, spatial, spatial), jnp.float32)
        out = jax.block_until_ready(fwd(packed, x))
        assert out.shape == (batch, num_actions), out.shape
        assert out.dtype == jnp.float32

        ref = jax.block_until_ready(dqn_reference(params, x))
        # bf16 operands with f32 accumulation: allow a bf16-level tolerance.
        assert jnp.allclose(out, ref, rtol=3e-2, atol=3e-2), (batch, out, ref)

    print("KERNEL_OK")
</pallas_src>

<mosaic_0001>
module attributes {stable_mosaic.version = 11 : i64} {
  func.func @_matmul_bias_act_kernel(%arg0: i32, %arg1: memref<128x256xbf16, #tpu.memory_space<vmem>>, %arg2: memref<256x128xbf16, #tpu.memory_space<vmem>>, %arg3: memref<1x128xf32, #tpu.memory_space<vmem>>, %arg4: memref<128x128xbf16, #tpu.memory_space<vmem>>) attributes {dimension_semantics = [#tpu.dimension_semantics<parallel>], iteration_bounds = array<i64: 1>, scalar_prefetch = 0 : i64, scratch_operands = 0 : i64, tpu.core_type = #tpu.core_type<tc>, window_params = [{transform_indices = @transform_0, window_bounds = array<i64: 128, 256>}, {pipeline_mode = #tpu.pipeline_mode<synchronous>, transform_indices = @transform_1, window_bounds = array<i64: 256, 128>}, {pipeline_mode = #tpu.pipeline_mode<synchronous>, transform_indices = @transform_2, window_bounds = array<i64: 1, 128>}, {transform_indices = @transform_3, window_bounds = array<i64: 128, 128>}]} {
    %c0 = arith.constant 0 : index
    %c0_0 = arith.constant 0 : index
    %0 = vector.load %arg1[%c0, %c0_0] : memref<128x256xbf16, #tpu.memory_space<vmem>>, vector<128x256xbf16>
    %c0_1 = arith.constant 0 : index
    %c0_2 = arith.constant 0 : index
    %1 = vector.load %arg2[%c0_1, %c0_2] : memref<256x128xbf16, #tpu.memory_space<vmem>>, vector<256x128xbf16>
    %cst = arith.constant dense<0.000000e+00> : vector<128x128xf32>
    %2 = tpu.matmul %0, %1, %cst {dimension_numbers = #tpu.dot_dimension_numbers<[1], [0], [0], [1], [0, 0, 1, 1], [], []>} : vector<128x256xbf16>, vector<256x128xbf16>, vector<128x128xf32> -> vector<128x128xf32>
    %c0_3 = arith.constant 0 : index
    %c0_4 = arith.constant 0 : index
    %3 = vector.load %arg3[%c0_3, %c0_4] : memref<1x128xf32, #tpu.memory_space<vmem>>, vector<1x128xf32>
    %4 = vector.broadcast %3 : vector<1x128xf32> to vector<128x128xf32>
    %5 = arith.addf %2, %4 : vector<128x128xf32>
    %cst_5 = arith.constant 0.000000e+00 : f32
    %6 = vector.broadcast %cst_5 : f32 to vector<128x128xf32>
    %7 = arith.maximumf %5, %6 : vector<128x128xf32>
    %8 = arith.truncf %7 : vector<128x128xf32> to vector<128x128xbf16>
    %c0_6 = arith.constant 0 : index
    %c0_7 = arith.constant 0 : index
    %9 = vector.load %arg4[%c0_6, %c0_7] : memref<128x128xbf16, #tpu.memory_space<vmem>>, vector<128x128xbf16>
    tpu.vector_store %arg4[%c0_6, %c0_7], %8 {strides = array<i32>} : memref<128x128xbf16, #tpu.memory_space<vmem>>, vector<128x128xbf16>,
    return
  }
  func.func @transform_0(%arg0: i32) -> (i32, i32) {
    %c0_i32 = arith.constant 0 : i32
    %c0_i32_0 = arith.constant 0 : i32
    return %arg0, %c0_i32 : i32, i32
  }
  func.func @transform_1(%arg0: i32) -> (i32, i32) {
    %c0_i32 = arith.constant 0 : i32
    %c0_i32_0 = arith.constant 0 : i32
    %c0_i32_1 = arith.constant 0 : i32
    return %c0_i32, %c0_i32_0 : i32, i32
  }
  func.func @transform_2(%arg0: i32) -> (i32, i32) {
    %c0_i32 = arith.constant 0 : i32
    %c0_i32_0 = arith.constant 0 : i32
    %c0_i32_1 = arith.constant 0 : i32
    return %c0_i32, %c0_i32_0 : i32, i32
  }
  func.func @transform_3(%arg0: i32) -> (i32, i32) {
    %c0_i32 = arith.constant 0 : i32
    %c0_i32_0 = arith.constant 0 : i32
    return %arg0, %c0_i32 : i32, i32
  }
}

module attributes {stable_mosaic.version = 11 : i64} {
  func.func @_matmul_bias_act_kernel(%arg0: i32, %arg1: memref<8x1152xbf16, #tpu.memory_space<vmem>>, %arg2: memref<1152x128xbf16, #tpu.memory_space<vmem>>, %arg3: memref<1x128xf32, #tpu.memory_space<vmem>>, %arg4: memref<8x128xbf16, #tpu.memory_space<vmem>>) attributes {dimension_semantics = [#tpu.dimension_semantics<parallel>], iteration_bounds = array<i64: 1>, scalar_prefetch = 0 : i64, scratch_operands = 0 : i64, tpu.core_type = #tpu.core_type<tc>, window_params = [{transform_indices = @transform_0, window_bounds = array<i64: 8, 1152>}, {pipeline_mode = #tpu.pipeline_mode<synchronous>, transform_indices = @transform_1, window_bounds = array<i64: 1152, 128>}, {pipeline_mode = #tpu.pipeline_mode<synchronous>, transform_indices = @transform_2, window_bounds = array<i64: 1, 128>}, {transform_indices = @transform_3, window_bounds = array<i64: 8, 128>}]} {
    %c0 = arith.constant 0 : index
    %c0_0 = arith.constant 0 : index
    %0 = vector.load %arg1[%c0, %c0_0] : memref<8x1152xbf16, #tpu.memory_space<vmem>>, vector<8x1152xbf16>
    %c0_1 = arith.constant 0 : index
    %c0_2 = arith.constant 0 : index
    %1 = vector.load %arg2[%c0_1, %c0_2] : memref<1152x128xbf16, #tpu.memory_space<vmem>>, vector<1152x128xbf16>
    %cst = arith.constant dense<0.000000e+00> : vector<8x128xf32>
    %2 = tpu.matmul %0, %1, %cst {dimension_numbers = #tpu.dot_dimension_numbers<[1], [0], [0], [1], [0, 0, 1, 1], [], []>} : vector<8x1152xbf16>, vector<1152x128xbf16>, vector<8x128xf32> -> vector<8x128xf32>
    %c0_3 = arith.constant 0 : index
    %c0_4 = arith.constant 0 : index
    %3 = vector.load %arg3[%c0_3, %c0_4] : memref<1x128xf32, #tpu.memory_space<vmem>>, vector<1x128xf32>
    %4 = vector.broadcast %3 : vector<1x128xf32> to vector<8x128xf32>
    %5 = arith.addf %2, %4 : vector<8x128xf32>
    %cst_5 = arith.constant 0.000000e+00 : f32
    %6 = vector.broadcast %cst_5 : f32 to vector<8x128xf32>
    %7 = arith.maximumf %5, %6 : vector<8x128xf32>
    %8 = arith.truncf %7 : vector<8x128xf32> to vector<8x128xbf16>
    %c0_6 = arith.constant 0 : index
    %c0_7 = arith.constant 0 : index
    %9 = vector.load %arg4[%c0_6, %c0_7] : memref<8x128xbf16, #tpu.memory_space<vmem>>, vector<8x128xbf16>
    tpu.vector_store %arg4[%c0_6, %c0_7], %8 {strides = array<i32>} : memref<8x128xbf16, #tpu.memory_space<vmem>>, vector<8x128xbf16>,
    return
  }
  func.func @transform_0(%arg0: i32) -> (i32, i32) {
    %c0_i32 = arith.constant 0 : i32
    %c0_i32_0 = arith.constant 0 : i32
    return %arg0, %c0_i32 : i32, i32
  }
  func.func @transform_1(%arg0: i32) -> (i32, i32) {
    %c0_i32 = arith.constant 0 : i32
    %c0_i32_0 = arith.constant 0 : i32
    %c0_i32_1 = arith.constant 0 : i32
    return %c0_i32, %c0_i32_0 : i32, i32
  }
  func.func @transform_2(%arg0: i32) -> (i32, i32) {
    %c0_i32 = arith.constant 0 : i32
    %c0_i32_0 = arith.constant 0 : i32
    %c0_i32_1 = arith.constant 0 : i32
    return %c0_i32, %c0_i32_0 : i32, i32
  }
  func.func @transform_3(%arg0: i32) -> (i32, i32) {
    %c0_i32 = arith.constant 0 : i32
    %c0_i32_0 = arith.constant 0 : i32
    return %arg0, %c0_i32 : i32, i32
  }
}

module attributes {stable_mosaic.version = 11 : i64} {
  func.func @_matmul_bias_act_kernel(%arg0: i32, %arg1: memref<24x2048xbf16, #tpu.memory_space<vmem>>, %arg2: memref<2048x128xbf16, #tpu.memory_space<vmem>>, %arg3: memref<1x128xf32, #tpu.memory_space<vmem>>, %arg4: memref<24x128xbf16, #tpu.memory_space<vmem>>) attributes {dimension_semantics = [#tpu.dimension_semantics<parallel>], iteration_bounds = array<i64: 1>, scalar_prefetch = 0 : i64, scratch_operands = 0 : i64, tpu.core_type = #tpu.core_type<tc>, window_params = [{transform_indices = @transform_0, window_bounds = array<i64: 24, 2048>}, {pipeline_mode = #tpu.pipeline_mode<synchronous>, transform_indices = @transform_1, window_bounds = array<i64: 2048, 128>}, {pipeline_mode = #tpu.pipeline_mode<synchronous>, transform_indices = @transform_2, window_bounds = array<i64: 1, 128>}, {transform_indices = @transform_3, window_bounds = array<i64: 24, 128>}]} {
    %c0 = arith.constant 0 : index
    %c0_0 = arith.constant 0 : index
    %0 = vector.load %arg1[%c0, %c0_0] : memref<24x2048xbf16, #tpu.memory_space<vmem>>, vector<24x2048xbf16>
    %c0_1 = arith.constant 0 : index
    %c0_2 = arith.constant 0 : index
    %1 = vector.load %arg2[%c0_1, %c0_2] : memref<2048x128xbf16, #tpu.memory_space<vmem>>, vector<2048x128xbf16>
    %cst = arith.constant dense<0.000000e+00> : vector<24x128xf32>
    %2 = tpu.matmul %0, %1, %cst {dimension_numbers = #tpu.dot_dimension_numbers<[1], [0], [0], [1], [0, 0, 1, 1], [], []>} : vector<24x2048xbf16>, vector<2048x128xbf16>, vector<24x128xf32> -> vector<24x128xf32>
    %c0_3 = arith.constant 0 : index
    %c0_4 = arith.constant 0 : index
    %3 = vector.load %arg3[%c0_3, %c0_4] : memref<1x128xf32, #tpu.memory_space<vmem>>, vector<1x128xf32>
    %4 = vector.broadcast %3 : vector<1x128xf32> to vector<24x128xf32>
    %5 = arith.addf %2, %4 : vector<24x128xf32>
    %cst_5 = arith.constant 0.000000e+00 : f32
    %6 = vector.broadcast %cst_5 : f32 to vector<24x128xf32>
    %7 = arith.maximumf %5, %6 : vector<24x128xf32>
    %8 = arith.truncf %7 : vector<24x128xf32> to vector<24x128xbf16>
    %c0_6 = arith.constant 0 : index
    %c0_7 = arith.constant 0 : index
    %9 = vector.load %arg4[%c0_6, %c0_7] : memref<24x128xbf16, #tpu.memory_space<vmem>>, vector<24x128xbf16>
    tpu.vector_store %arg4[%c0_6, %c0_7], %8 {strides = array<i32>} : memref<24x128xbf16, #tpu.memory_space<vmem>>, vector<24x128xbf16>,
    return
  }
  func.func @transform_0(%arg0: i32) -> (i32, i32) {
    %c0_i32 = arith.constant 0 : i32
    %c0_i32_0 = arith.constant 0 : i32
    return %arg0, %c0_i32 : i32, i32
  }
  func.func @transform_1(%arg0: i32) -> (i32, i32) {
    %c0_i32 = arith.constant 0 : i32
    %c0_i32_0 = arith.constant 0 : i32
    %c0_i32_1 = arith.constant 0 : i32
    return %c0_i32, %c0_i32_0 : i32, i32
  }
  func.func @transform_2(%arg0: i32) -> (i32, i32) {
    %c0_i32 = arith.constant 0 : i32
    %c0_i32_0 = arith.constant 0 : i32
    %c0_i32_1 = arith.constant 0 : i32
    return %c0_i32, %c0_i32_0 : i32, i32
  }
  func.func @transform_3(%arg0: i32) -> (i32, i32) {
    %c0_i32 = arith.constant 0 : i32
    %c0_i32_0 = arith.constant 0 : i32
    return %arg0, %c0_i32 : i32, i32
  }
}

module attributes {stable_mosaic.version = 11 : i64} {
  func.func @_fc_head_kernel(%arg0: i32, %arg1: memref<8x128xbf16, #tpu.memory_space<vmem>>, %arg2: memref<128x512xbf16, #tpu.memory_space<vmem>>, %arg3: memref<1x512xf32, #tpu.memory_space<vmem>>, %arg4: memref<512x128xbf16, #tpu.memory_space<vmem>>, %arg5: memref<1x128xf32, #tpu.memory_space<vmem>>, %arg6: memref<8x128xf32, #tpu.memory_space<vmem>>) attributes {dimension_semantics = [#tpu.dimension_semantics<parallel>], iteration_bounds = array<i64: 1>, scalar_prefetch = 0 : i64, scratch_operands = 0 : i64, tpu.core_type = #tpu.core_type<tc>, window_params = [{transform_indices = @transform_0, window_bounds = array<i64: 8, 128>}, {pipeline_mode = #tpu.pipeline_mode<synchronous>, transform_indices = @transform_1, window_bounds = array<i64: 128, 512>}, {pipeline_mode = #tpu.pipeline_mode<synchronous>, transform_indices = @transform_2, window_bounds = array<i64: 1, 512>}, {pipeline_mode = #tpu.pipeline_mode<synchronous>, transform_indices = @transform_3, window_bounds = array<i64: 512, 128>}, {pipeline_mode = #tpu.pipeline_mode<synchronous>, transform_indices = @transform_4, window_bounds = array<i64: 1, 128>}, {transform_indices = @transform_5, window_bounds = array<i64: 8, 128>}]} {
    %c0 = arith.constant 0 : index
    %c0_0 = arith.constant 0 : index
    %0 = vector.load %arg1[%c0, %c0_0] : memref<8x128xbf16, #tpu.memory_space<vmem>>, vector<8x128xbf16>
    %c0_1 = arith.constant 0 : index
    %c0_2 = arith.constant 0 : index
    %1 = vector.load %arg2[%c0_1, %c0_2] : memref<128x512xbf16, #tpu.memory_space<vmem>>, vector<128x512xbf16>
    %cst = arith.constant dense<0.000000e+00> : vector<8x512xf32>
    %2 = tpu.matmul %0, %1, %cst {dimension_numbers = #tpu.dot_dimension_numbers<[1], [0], [0], [1], [0, 0, 1, 1], [], []>} : vector<8x128xbf16>, vector<128x512xbf16>, vector<8x512xf32> -> vector<8x512xf32>
    %c0_3 = arith.constant 0 : index
    %c0_4 = arith.constant 0 : index
    %3 = vector.load %arg3[%c0_3, %c0_4] : memref<1x512xf32, #tpu.memory_space<vmem>>, vector<1x512xf32>
    %4 = vector.broadcast %3 : vector<1x512xf32> to vector<8x512xf32>
    %5 = arith.addf %2, %4 : vector<8x512xf32>
    %cst_5 = arith.constant 0.000000e+00 : f32
    %6 = vector.broadcast %cst_5 : f32 to vector<8x512xf32>
    %7 = arith.maximumf %5, %6 : vector<8x512xf32>
    %8 = arith.truncf %7 : vector<8x512xf32> to vector<8x512xbf16>
    %c0_6 = arith.constant 0 : index
    %c0_7 = arith.constant 0 : index
    %9 = vector.load %arg4[%c0_6, %c0_7] : memref<512x128xbf16, #tpu.memory_space<vmem>>, vector<512x128xbf16>
    %cst_8 = arith.constant dense<0.000000e+00> : vector<8x128xf32>
    %10 = tpu.matmul %8, %9, %cst_8 {dimension_numbers = #tpu.dot_dimension_numbers<[1], [0], [0], [1], [0, 0, 1, 1], [], []>} : vector<8x512xbf16>, vector<512x128xbf16>, vector<8x128xf32> -> vector<8x128xf32>
    %c0_9 = arith.constant 0 : index
    %c0_10 = arith.constant 0 : index
    %11 = vector.load %arg5[%c0_9, %c0_10] : memref<1x128xf32, #tpu.memory_space<vmem>>, vector<1x128xf32>
    %12 = vector.broadcast %11 : vector<1x128xf32> to vector<8x128xf32>
    %13 = arith.addf %10, %12 : vector<8x128xf32>
    %c0_11 = arith.constant 0 : index
    %c0_12 = arith.constant 0 : index
    %14 = vector.load %arg6[%c0_11, %c0_12] : memref<8x128xf32, #tpu.memory_space<vmem>>, vector<8x128xf32>
    tpu.vector_store %arg6[%c0_11, %c0_12], %13 {strides = array<i32>} : memref<8x128xf32, #tpu.memory_space<vmem>>, vector<8x128xf32>,
    return
  }
  func.func @transform_0(%arg0: i32) -> (i32, i32) {
    %c0_i32 = arith.constant 0 : i32
    %c0_i32_0 = arith.constant 0 : i32
    return %arg0, %c0_i32 : i32, i32
  }
  func.func @transform_1(%arg0: i32) -> (i32, i32) {
    %c0_i32 = arith.constant 0 : i32
    %c0_i32_0 = arith.constant 0 : i32
    %c0_i32_1 = arith.constant 0 : i32
    return %c0_i32, %c0_i32_0 : i32, i32
  }
  func.func @transform_2(%arg0: i32) -> (i32, i32) {
    %c0_i32 = arith.constant 0 : i32
    %c0_i32_0 = arith.constant 0 : i32
    %c0_i32_1 = arith.constant 0 : i32
    return %c0_i32, %c0_i32_0 : i32, i32
  }
  func.func @transform_3(%arg0: i32) -> (i32, i32) {
    %c0_i32 = arith.constant 0 : i32
    %c0_i32_0 = arith.constant 0 : i32
    %c0_i32_1 = arith.constant 0 : i32
    return %c0_i32, %c0_i32_0 : i32, i32
  }
  func.func @transform_4(%arg0: i32) -> (i32, i32) {
    %c0_i32 = arith.constant 0 : i32
    %c0_i32_0 = arith.constant 0 : i32
    %c0_i32_1 = arith.constant 0 : i32
    return %c0_i32, %c0_i32_0 : i32, i32
  }
  func.func @transform_5(%arg0: i32) -> (i32, i32) {
    %c0_i32 = arith.constant 0 : i32
    %c0_i32_0 = arith.constant 0 : i32
    return %arg0, %c0_i32 : i32, i32
  }
}

</mosaic_0001>

<bundles_post_ra>
// kernel: dqn_forward.4
= control target key start
LH: loop header
LB: loop body
LE: loop exit
PB: predicated region body
PF: predicated region fallthrough
CT: control target
= control target key end

     0   :  { %s836_s1 = inlined_call_operand.vmem [shape: bf16[256,128], index: 1, kind: input, shape index: {}]   ;;  %s837_s0 = inlined_call_operand.vmem [shape: bf16[128,256], index: 0, kind: input, shape index: {}]   ;;  %s838_s2 = inlined_call_operand.vmem [shape: f32[1,128], index: 2, kind: input, shape index: {}]   ;;  %s839_s3 = inlined_call_operand.vmem [shape: bf16[128,128], index: 3, kind: output, shape index: {}]  }
   0x1   :  { %v635_v0 = vld [vmem:[%s836_s1 + $0x40] sm:$0xff]   ;;  %v637_v2 = vld [vmem:[%s836_s1 + $0x48] sm:$0xff]   ;;  %v639_v4 = vld [vmem:[%s836_s1 + $0x50] sm:$0xff]  }
   0x2   :  { %v636_v1 = vld [vmem:[%s836_s1] sm:$0xff]   ;;  %555 = vmatprep.subr.bf16.mxu0 %v635_v0  ;;  %619 = vmatprep.subr.bf16.mxu1 %v635_v0  ;;  %v638_v3 = vld [vmem:[%s836_s1 + $0x8] sm:$0xff]   ;;  %v640_v5 = vld [vmem:[%s836_s1 + $0x10] sm:$0xff]  }
   0x3   :  { %556 = vmatpush3.bf16.msra.mxu0 %v636_v1  ;;  %627 = vmatpush3.bf16.msra.mxu1 %v636_v1  ;;  %v641_v6 = vld [vmem:[%s836_s1 + $0x58] sm:$0xff]   ;;  %v643_v8 = vld [vmem:[%s836_s1 + $0x60] sm:$0xff]   ;;  %v645_v10 = vld [vmem:[%s836_s1 + $0x68] sm:$0xff]  }
   0x4   :  { %557 = vmatprep.subr.bf16.mxu0 %v637_v2  ;;  %620 = vmatprep.subr.bf16.mxu1 %v637_v2  ;;  %v642_v7 = vld [vmem:[%s836_s1 + $0x18] sm:$0xff]   ;;  %v644_v9 = vld [vmem:[%s836_s1 + $0x20] sm:$0xff]   ;;  %v646_v13 = vld [vmem:[%s836_s1 + $0x28] sm:$0xff]  }
   0x5   :  { %v653_v11 = vld [vmem:[%s837_s0 + $0x4] ss:$8 sps:$4 sm:$0xff]   ;;  %v647_v14 = vld [vmem:[%s836_s1 + $0x70] sm:$0xff]   ;;  %v649_v16 = vld [vmem:[%s836_s1 + $0x78] sm:$0xff]  }
   0x6   :  { %v656_v12 = vld [vmem:[%s837_s0 + $0x44] ss:$8 sps:$4 sm:$0xff]   ;;  %278 = vmatprep.mubr.bf16.mxu0 %v653_v11  ;;  %v648_v15 = vld [vmem:[%s836_s1 + $0x30] sm:$0xff]   ;;  %v650_v17 = vld [vmem:[%s836_s1 + $0x38] sm:$0xff]  }
   0x7   :  { %558 = vmatpush3.bf16.msra.mxu0 %v638_v3  ;;  %628 = vmatpush3.bf16.msra.mxu1 %v638_v3  ;;  %v651_v18 = vld [vmem:[%s837_s0] ss:$8 sps:$4 sm:$0xff]   ;;  %v657_v20 = vld [vmem:[%s837_s0 + $0x14] ss:$8 sps:$4 sm:$0xff]   ;;  %v661_v22 = vld [vmem:[%s837_s0 + $0x10] ss:$8 sps:$4 sm:$0xff]  }
   0x8   :  { %559 = vmatprep.subr.bf16.mxu0 %v639_v4  ;;  %621 = vmatprep.subr.bf16.mxu1 %v639_v4  ;;  %v654_v19 = vld [vmem:[%s837_s0 + $0x40] ss:$8 sps:$4 sm:$0xff]   ;;  %v659_v21 = vld [vmem:[%s837_s0 + $0x54] ss:$8 sps:$4 sm:$0xff]   ;;  %v662_v23 = vld [vmem:[%s837_s0 + $0x50] ss:$8 sps:$4 sm:$0xff]  }
   0x9   :  { %310 = vmatprep.mubr.bf16.mxu1 %v656_v12  ;;  %v663_v24 = vld [vmem:[%s837_s0 + $0x24] ss:$8 sps:$4 sm:$0xff]   ;;  %v667_v26 = vld [vmem:[%s837_s0 + $0x20] ss:$8 sps:$4 sm:$0xff]   ;;  %v669_v28 = vld [vmem:[%s837_s0 + $0x34] ss:$8 sps:$4 sm:$0xff]  }
   0xa   :  { %v665_v25 = vld [vmem:[%s837_s0 + $0x64] ss:$8 sps:$4 sm:$0xff]   ;;  %v668_v27 = vld [vmem:[%s837_s0 + $0x60] ss:$8 sps:$4 sm:$0xff]   ;;  %v671_v29 = vld [vmem:[%s837_s0 + $0x74] ss:$8 sps:$4 sm:$0xff]  }
   0xb   :  { %560 = vmatpush3.bf16.msra.mxu0 %v640_v5  ;;  %629 = vmatpush3.bf16.msra.mxu1 %v640_v5  ;;  %v673_v30 = vld [vmem:[%s837_s0 + $0x30] ss:$8 sps:$4 sm:$0xff]   ;;  %v794_v34 = vld [vmem:[%s838_s2] ss:$0 sm:$0xff] }
   0xc   :  { %561 = vmatprep.subr.bf16.mxu0 %v641_v6  ;;  %622 = vmatprep.subr.bf16.mxu1 %v641_v6  ;;  %v674_v31 = vld [vmem:[%s837_s0 + $0x70] ss:$8 sps:$4 sm:$0xff]  }
   0xf   :  { %562 = vmatpush3.bf16.msra.mxu0 %v642_v7  ;;  %630 = vmatpush3.bf16.msra.mxu1 %v642_v7 }
  0x10   :  { %563 = vmatprep.subr.bf16.mxu0 %v643_v8  ;;  %623 = vmatprep.subr.bf16.mxu1 %v643_v8 }
  0x13   :  { %564 = vmatpush3.bf16.msra.mxu0 %v644_v9  ;;  %631 = vmatpush3.bf16.msra.mxu1 %v644_v9 }
  0x14   :  { %565 = vmatprep.subr.bf16.mxu0 %v645_v10  ;;  %624 = vmatprep.subr.bf16.mxu1 %v645_v10 }
  0x17   :  { %566 = vmatpush3.bf16.msra.mxu0 %v646_v13  ;;  %632 = vmatpush3.bf16.msra.mxu1 %v646_v13 }
  0x18   :  { %567 = vmatprep.subr.bf16.mxu0 %v647_v14  ;;  %625 = vmatprep.subr.bf16.mxu1 %v647_v14 }
  0x1b   :  { %568 = vmatpush3.bf16.msra.mxu0 %v648_v15  ;;  %633 = vmatpush3.bf16.msra.mxu1 %v648_v15 }
  0x1c   :  { %569 = vmatprep.subr.bf16.mxu0 %v649_v16  ;;  %626 = vmatprep.subr.bf16.mxu1 %v649_v16 }
  0x1f   :  { %570 = vmatpush3.bf16.msra.mxu0 %v650_v17  ;;  %634 = vmatpush3.bf16.msra.mxu1 %v650_v17 }
  0x22   :  { %279 = vmatmul.mubr.bf16.vlgmr.msra.gmra.mrb[0].mxu0 %v651_v18  ;;  %311 = vmatmul.mubr.bf16.vlgmr.msra.gmra.mrb[0].mxu1 %v654_v19 }
  0x23   :  { %286 = vmatprep.mubr.bf16.mxu0 %v657_v20  ;;  %318 = vmatprep.mubr.bf16.mxu1 %v659_v21 }
  0x2a   :  { %287 = vmatmul.mubr.bf16.gmra.mrb[4].mxu0 %v661_v22  ;;  %319 = vmatmul.mubr.bf16.gmra.mrb[4].mxu1 %v662_v23 }
  0x2b   :  { %294 = vmatprep.mubr.bf16.mxu0 %v663_v24  ;;  %326 = vmatprep.mubr.bf16.mxu1 %v665_v25 }
  0x32   :  { %295 = vmatmul.mubr.bf16.gmra.mrb[8].mxu0 %v667_v26  ;;  %327 = vmatmul.mubr.bf16.gmra.mrb[8].mxu1 %v668_v27 }
  0x33   :  { %302 = vmatprep.mubr.bf16.mxu0 %v669_v28  ;;  %334 = vmatprep.mubr.bf16.mxu1 %v671_v29 }
  0x3a   :  { %303 = vmatmul.mubr.bf16.gmra.mrb[12].mxu0 %v673_v30  ;;  %335 = vmatmul.mubr.bf16.gmra.mrb[12].mxu1 %v674_v31 }
  0xf5   :  { %v571_v32 = vpop.f32.mrb[0].mxu0  ;;  %v595_v33 = vpop.f32.mrb[0].mxu1 }
  0xf6   :  { %v572_v35 = vpop.f32.mrb[1].mxu0  ;;  %v596_v36 = vpop.f32.mrb[1].mxu1 }
  0xf7   :  { %v573_v37 = vadd.f32 %v572_v35, %v571_v32  ;;  %v597_v38 = vadd.f32 %v596_v36, %v595_v33  ;;  %v574_v39 = vpop.f32.mrb[2].mxu0  ;;  %v598_v40 = vpop.f32.mrb[2].mxu1 }
  0xf8   :  { %v575_v41 = vpop.f32.mrb[3].mxu0  ;;  %v599_v42 = vpop.f32.mrb[3].mxu1 }
  0xf9   :  { %v281_v43 = vadd.f32 %v573_v37, %v794_v34  ;;  %v313_v44 = vadd.f32 %v597_v38, %v794_v34  ;;  %v576_v45 = vadd.f32 %v575_v41, %v574_v39  ;;  %v600_v46 = vadd.f32 %v599_v42, %v598_v40 }
  0xfb   :  { %v284_v47 = vadd.f32 %v576_v45, %v794_v34  ;;  %v316_v48 = vadd.f32 %v600_v46, %v794_v34  ;;  %v343_v49 = vmax.f32 %v281_v43, 0.0  ;;  %v351_v50 = vmax.f32 %v313_v44, 0.0 }
  0xfd   :  { %v344_v51 = vmax.f32 %v284_v47, 0.0  ;;  %v352_v52 = vmax.f32 %v316_v48, 0.0  ;;  %v577_v53 = vpop.f32.mrb[4].mxu0  ;;  %v601_v54 = vpop.f32.mrb[4].mxu1 }
  0xfe   :  { %v578_v55 = vpop.f32.mrb[5].mxu0  ;;  %v602_v56 = vpop.f32.mrb[5].mxu1 }
  0xff   :  { %v511_v57 = vpack.c.bf16 %v344_v51, %v343_v49  ;;  %v531_v58 = vpack.c.bf16 %v352_v52, %v351_v50  ;;  %v579_v59 = vadd.f32 %v578_v55, %v577_v53  ;;  %v603_v60 = vadd.f32 %v602_v56, %v601_v54  ;;  %v580_v61 = vpop.f32.mrb[6].mxu0  ;;  %v604_v62 = vpop.f32.mrb[6].mxu1 }
 0x100   :  { %v581_v63 = vpop.f32.mrb[7].mxu0  ;;  %v605_v0 = vpop.f32.mrb[7].mxu1 }
 0x101   :  { %512 = vst [vmem:[%s839_s3] sm:$0xff] %v511_v57   ;;  %551 = vst [vmem:[%s839_s3 + $0x20] sm:$0xff] %v531_v58   ;;  %v289_v1 = vadd.f32 %v579_v59, %v794_v34  ;;  %v321_v2 = vadd.f32 %v603_v60, %v794_v34  ;;  %v582_v3 = vadd.f32 %v581_v63, %v580_v61 }
 0x102   :  { %v606_v4 = vadd.f32 %v605_v0, %v604_v62 }
 0x103   :  { %v292_v5 = vadd.f32 %v582_v3, %v794_v34  ;;  %v345_v7 = vmax.f32 %v289_v1, 0.0  ;;  %v353_v8 = vmax.f32 %v321_v2, 0.0 }
 0x104   :  { %v324_v6 = vadd.f32 %v606_v4, %v794_v34 }
 0x105   :  { %v346_v9 = vmax.f32 %v292_v5, 0.0  ;;  %v583_v11 = vpop.f32.mrb[8].mxu0  ;;  %v607_v12 = vpop.f32.mrb[8].mxu1 }
 0x106   :  { %v354_v10 = vmax.f32 %v324_v6, 0.0  ;;  %v584_v13 = vpop.f32.mrb[9].mxu0  ;;  %v608_v14 = vpop.f32.mrb[9].mxu1 }
 0x107   :  { %v516_v15 = vpack.c.bf16 %v346_v9, %v345_v7  ;;  %v585_v17 = vadd.f32 %v584_v13, %v583_v11  ;;  %v609_v18 = vadd.f32 %v608_v14, %v607_v12  ;;  %v586_v19 = vpop.f32.mrb[10].mxu0  ;;  %v610_v20 = vpop.f32.mrb[10].mxu1 }
 0x108   :  { %v536_v16 = vpack.c.bf16 %v354_v10, %v353_v8  ;;  %v587_v21 = vpop.f32.mrb[11].mxu0  ;;  %v611_v22 = vpop.f32.mrb[11].mxu1 }
 0x109   :  { %548 = vst [vmem:[%s839_s3 + $0x8] sm:$0xff] %v516_v15   ;;  %v297_v23 = vadd.f32 %v585_v17, %v794_v34  ;;  %v329_v24 = vadd.f32 %v609_v18, %v794_v34  ;;  %v588_v25 = vadd.f32 %v587_v21, %v586_v19  ;;  %v612_v26 = vadd.f32 %v611_v22, %v610_v20 }
 0x10a   :  { %552 = vst [vmem:[%s839_s3 + $0x28] sm:$0xff] %v536_v16  }
 0x10b   :  { %v300_v27 = vadd.f32 %v588_v25, %v794_v34  ;;  %v332_v28 = vadd.f32 %v612_v26, %v794_v34  ;;  %v347_v29 = vmax.f32 %v297_v23, 0.0  ;;  %v355_v30 = vmax.f32 %v329_v24, 0.0 }
 0x10d   :  { %v348_v31 = vmax.f32 %v300_v27, 0.0  ;;  %v356_v32 = vmax.f32 %v332_v28, 0.0  ;;  %v589_v33 = vpop.f32.mrb[12].mxu0  ;;  %v613_v35 = vpop.f32.mrb[12].mxu1 }
 0x10e   :  { %v590_v36 = vpop.f32.mrb[13].mxu0  ;;  %v614_v37 = vpop.f32.mrb[13].mxu1 }
 0x10f   :  { %v521_v38 = vpack.c.bf16 %v348_v31, %v347_v29  ;;  %v541_v39 = vpack.c.bf16 %v356_v32, %v355_v30  ;;  %v591_v40 = vadd.f32 %v590_v36, %v589_v33  ;;  %v615_v41 = vadd.f32 %v614_v37, %v613_v35  ;;  %v592_v42 = vpop.f32.mrb[14].mxu0  ;;  %v616_v43 = vpop.f32.mrb[14].mxu1 }
 0x110   :  { %v593_v44 = vpop.f32.mrb[15].mxu0  ;;  %v617_v45 = vpop.f32.mrb[15].mxu1 }
 0x111   :  { %549 = vst [vmem:[%s839_s3 + $0x10] sm:$0xff] %v521_v38   ;;  %553 = vst [vmem:[%s839_s3 + $0x30] sm:$0xff] %v541_v39   ;;  %v305_v46 = vadd.f32 %v591_v40, %v794_v34  ;;  %v337_v47 = vadd.f32 %v615_v41, %v794_v34  ;;  %v594_v48 = vadd.f32 %v593_v44, %v592_v42 }
 0x112   :  { %v618_v49 = vadd.f32 %v617_v45, %v616_v43 }
 0x113   :  { %v308_v50 = vadd.f32 %v594_v48, %v794_v34  ;;  %v349_v52 = vmax.f32 %v305_v46, 0.0  ;;  %v357_v53 = vmax.f32 %v337_v47, 0.0 }
 0x114   :  { %v340_v51 = vadd.f32 %v618_v49, %v794_v34 }
 0x115   :  { %v350_v54 = vmax.f32 %v308_v50, 0.0 }
 0x116   :  { %v358_v55 = vmax.f32 %v340_v51, 0.0 }
 0x117   :  { %v526_v56 = vpack.c.bf16 %v350_v54, %v349_v52 }
 0x118   :  { %v546_v57 = vpack.c.bf16 %v358_v55, %v357_v53 }
 0x119   :  { %550 = vst [vmem:[%s839_s3 + $0x18] sm:$0xff] %v526_v56  }
 0x11a   :  { %554 = vst [vmem:[%s839_s3 + $0x38] sm:$0xff] %v546_v57  }

// kernel: dqn_forward.6
= control target key start
LH: loop header
LB: loop body
LE: loop exit
PB: predicated region body
PF: predicated region fallthrough
CT: control target
= control target key end

     0   :  { %vm1125_vm0 = vmmov 0   ;;  %s1383_s1 = inlined_call_operand.vmem [shape: bf16[1152,128], index: 1, kind: input, shape index: {}]   ;;  %s1384_s0 = inlined_call_operand.vmem [shape: bf16[8,1152], index: 0, kind: input, shape index: {}]   ;;  %s1385_s2 = inlined_call_operand.vmem [shape: f32[1,128], index: 2, kind: input, shape index: {}]   ;;  %s1386_s3 = inlined_call_operand.vmem [shape: bf16[8,128], index: 3, kind: output, shape index: {}]  }
   0x1   :  { %v1043_v0 = vld [vmem:[%s1383_s1 + $0x40] sm:$0xff]   ;;  %v1047_v4 = vld [vmem:[%s1383_s1 + $0x48] sm:$0xff]   ;;  %v1051_v8 = vld [vmem:[%s1383_s1 + $0x50] sm:$0xff]  }
   0x2   :  { %v1044_v1 = vld [vmem:[%s1383_s1] sm:$0xff]   ;;  %924 = vmatprep.subr.bf16.mxu0 %v1043_v0  ;;  %v1048_v5 = vld [vmem:[%s1383_s1 + $0x8] sm:$0xff]   ;;  %v1052_v9 = vld [vmem:[%s1383_s1 + $0x10] sm:$0xff]  }
   0x3   :  { %v1045_v2 = vld [vmem:[%s1383_s1 + $0xc0] sm:$0xff]   ;;  %925 = vmatpush3.bf16.msra.mxu0 %v1044_v1  ;;  %v1049_v6 = vld [vmem:[%s1383_s1 + $0xc8] sm:$0xff]   ;;  %v1053_v10 = vld [vmem:[%s1383_s1 + $0xd0] sm:$0xff]  }
   0x4   :  { %v1046_v3 = vld [vmem:[%s1383_s1 + $0x80] sm:$0xff]   ;;  %946 = vmatprep.subr.bf16.mxu1 %v1045_v2  ;;  %926 = vmatprep.subr.bf16.mxu0 %v1047_v4  ;;  %v1050_v7 = vld [vmem:[%s1383_s1 + $0x88] sm:$0xff]   ;;  %v1054_v11 = vld [vmem:[%s1383_s1 + $0x90] sm:$0xff]  }
   0x5   :  { %947 = vmatpush3.bf16.msra.mxu1 %v1046_v3  ;;  %v1055_v12 = vld [vmem:[%s1383_s1 + $0x58] sm:$0xff]   ;;  %v1059_v16 = vld [vmem:[%s1383_s1 + $0x60] sm:$0xff]   ;;  %v1063_v20 = vld [vmem:[%s1383_s1 + $0x68] sm:$0xff]  }
   0x6   :  { %948 = vmatprep.subr.bf16.mxu1 %v1049_v6  ;;  %v1056_v13 = vld [vmem:[%s1383_s1 + $0x18] sm:$0xff]   ;;  %v1060_v17 = vld [vmem:[%s1383_s1 + $0x20] sm:$0xff]   ;;  %v1064_v21 = vld [vmem:[%s1383_s1 + $0x28] sm:$0xff]  }
   0x7   :  { %927 = vmatpush3.bf16.msra.mxu0 %v1048_v5  ;;  %v1057_v14 = vld [vmem:[%s1383_s1 + $0xd8] sm:$0xff]   ;;  %v1061_v18 = vld [vmem:[%s1383_s1 + $0xe0] sm:$0xff]   ;;  %v1065_v22 = vld [vmem:[%s1383_s1 + $0xe8] sm:$0xff]  }
   0x8   :  { %928 = vmatprep.subr.bf16.mxu0 %v1051_v8  ;;  %v1058_v15 = vld [vmem:[%s1383_s1 + $0x98] sm:$0xff]   ;;  %v1062_v19 = vld [vmem:[%s1383_s1 + $0xa0] sm:$0xff]   ;;  %v1066_v23 = vld [vmem:[%s1383_s1 + $0xa8] sm:$0xff]  }
   0x9   :  { %949 = vmatpush3.bf16.msra.mxu1 %v1050_v7  ;;  %v1067_v24 = vld [vmem:[%s1383_s1 + $0x70] sm:$0xff]   ;;  %v1071_v28 = vld [vmem:[%s1383_s1 + $0x78] sm:$0xff]   ;;  %v15_v31 = vld [vmem:[%s1384_s0] sm:$0xff] }
   0xa   :  { %950 = vmatprep.subr.bf16.mxu1 %v1053_v10  ;;  %v1068_v25 = vld [vmem:[%s1383_s1 + $0x30] sm:$0xff]   ;;  %v1072_v29 = vld [vmem:[%s1383_s1 + $0x38] sm:$0xff]   ;;  %v843_v32 = vcombine.low %v15_v31, %v15_v31  ;;  %v844_v33 = vcombine.high %v15_v31, %v15_v31  ;;  %v1077_v35 = vld [vmem:[%s1383_s1 + $0x140] sm:$0xff]  }
   0xb   :  { %929 = vmatpush3.bf16.msra.mxu0 %v1052_v9  ;;  %v1069_v26 = vld [vmem:[%s1383_s1 + $0xf0] sm:$0xff]   ;;  %v1073_v30 = vld [vmem:[%s1383_s1 + $0xf8] sm:$0xff]   ;;  %v16_v36 = vld [vmem:[%s1384_s0 + $0x8] sm:$0xff]  ;;  %v1124_v9 = vmov 0.0  }
   0xc   :  { %930 = vmatprep.subr.bf16.mxu0 %v1055_v12  ;;  %v1070_v27 = vld [vmem:[%s1383_s1 + $0xb0] sm:$0xff]   ;;  %v1076_v34 = vld [vmem:[%s1383_s1 + $0xb8] sm:$0xff]   ;;  %667 = vmatprep.mubr.bf16.mxu0 %v844_v33  ;;  %v845_v37 = vcombine.low %v16_v36, %v16_v36  ;;  %v846_v38 = vcombine.high %v16_v36, %v16_v36  ;;  %v1080_v39 = vld [vmem:[%s1383_s1 + $0x100] sm:$0xff]  }
   0xd   :  { %951 = vmatpush3.bf16.msra.mxu1 %v1054_v11  ;;  %v1081_v40 = vld [vmem:[%s1383_s1 + $0x1c0] sm:$0xff]   ;;  %v1083_v42 = vld [vmem:[%s1383_s1 + $0x148] sm:$0xff]   ;;  %v1087_v46 = vld [vmem:[%s1383_s1 + $0x150] sm:$0xff]  }
   0xe   :  { %952 = vmatprep.subr.bf16.mxu1 %v1057_v14  ;;  %707 = vmatprep.mubr.bf16.mxu1 %v846_v38  ;;  %v1082_v41 = vld [vmem:[%s1383_s1 + $0x180] sm:$0xff]   ;;  %v1084_v43 = vld [vmem:[%s1383_s1 + $0x108] sm:$0xff]   ;;  %v1088_v47 = vld [vmem:[%s1383_s1 + $0x110] sm:$0xff]  }
   0xf   :  { %931 = vmatpush3.bf16.msra.mxu0 %v1056_v13  ;;  %v1085_v44 = vld [vmem:[%s1383_s1 + $0x1c8] sm:$0xff]   ;;  %v1089_v48 = vld [vmem:[%s1383_s1 + $0x1d0] sm:$0xff]   ;;  %v1091_v50 = vld [vmem:[%s1383_s1 + $0x158] sm:$0xff]  }
  0x10   :  { %932 = vmatprep.subr.bf16.mxu0 %v1059_v16  ;;  %v1086_v45 = vld [vmem:[%s1383_s1 + $0x188] sm:$0xff]   ;;  %v1090_v49 = vld [vmem:[%s1383_s1 + $0x190] sm:$0xff]   ;;  %v1092_v51 = vld [vmem:[%s1383_s1 + $0x118] sm:$0xff]  }
  0x11   :  { %953 = vmatpush3.bf16.msra.mxu1 %v1058_v15  ;;  %v1093_v52 = vld [vmem:[%s1383_s1 + $0x1d8] sm:$0xff]   ;;  %v1095_v54 = vld [vmem:[%s1383_s1 + $0x160] sm:$0xff]   ;;  %v1099_v58 = vld [vmem:[%s1383_s1 + $0x168] sm:$0xff]  }
  0x12   :  { %954 = vmatprep.subr.bf16.mxu1 %v1061_v18  ;;  %v1094_v53 = vld [vmem:[%s1383_s1 + $0x198] sm:$0xff]   ;;  %v1096_v55 = vld [vmem:[%s1383_s1 + $0x120] sm:$0xff]   ;;  %v1100_v59 = vld [vmem:[%s1383_s1 + $0x128] sm:$0xff]  }
  0x13   :  { %933 = vmatpush3.bf16.msra.mxu0 %v1060_v17  ;;  %v1097_v56 = vld [vmem:[%s1383_s1 + $0x1e0] sm:$0xff]   ;;  %v1101_v60 = vld [vmem:[%s1383_s1 + $0x1e8] sm:$0xff]   ;;  %v1103_v62 = vld [vmem:[%s1383_s1 + $0x170] sm:$0xff]  }
  0x14   :  { %934 = vmatprep.subr.bf16.mxu0 %v1063_v20  ;;  %v1098_v57 = vld [vmem:[%s1383_s1 + $0x1a0] sm:$0xff]   ;;  %v1102_v61 = vld [vmem:[%s1383_s1 + $0x1a8] sm:$0xff]   ;;  %v1104_v63 = vld [vmem:[%s1383_s1 + $0x130] sm:$0xff]  }
  0x15   :  { %955 = vmatpush3.bf16.msra.mxu1 %v1062_v19  ;;  %v1105_v0 = vld [vmem:[%s1383_s1 + $0x1f0] sm:$0xff]   ;;  %v1107_v2 = vld [vmem:[%s1383_s1 + $0x178] sm:$0xff]   ;;  %v1115_v13 = vld [vmem:[%s1383_s1 + $0x200] sm:$0xff]  }
  0x16   :  { %956 = vmatprep.subr.bf16.mxu1 %v1065_v22  ;;  %v1106_v1 = vld [vmem:[%s1383_s1 + $0x1b0] sm:$0xff]   ;;  %v1108_v3 = vld [vmem:[%s1383_s1 + $0x138] sm:$0xff]   ;;  %v1116_v14 = vld [vmem:[%s1383_s1 + $0x208] sm:$0xff]  }
  0x17   :  { %935 = vmatpush3.bf16.msra.mxu0 %v1064_v21  ;;  %v1109_v4 = vld [vmem:[%s1383_s1 + $0x1f8] sm:$0xff]   ;;  %v17_v5 = vld [vmem:[%s1384_s0 + $0x10] sm:$0xff]  ;;  %v1119_v17 = vld [vmem:[%s1383_s1 + $0x220] sm:$0xff]  }
  0x18   :  { %936 = vmatprep.subr.bf16.mxu0 %v1067_v24  ;;  %v847_v6 = vcombine.low %v17_v5, %v17_v5  ;;  %v848_v7 = vcombine.high %v17_v5, %v17_v5  ;;  %v1112_v8 = vld [vmem:[%s1383_s1 + $0x1b8] sm:$0xff]   ;;  %v1117_v15 = vld [vmem:[%s1383_s1 + $0x210] sm:$0xff]   ;;  %v1120_v18 = vld [vmem:[%s1383_s1 + $0x228] sm:$0xff]  }
  0x19   :  { %957 = vmatpush3.bf16.msra.mxu1 %v1066_v23  ;;  %v18_v10 = vld [vmem:[%s1384_s0 + $0x18] sm:$0xff]  ;;  %v1121_v19 = vld [vmem:[%s1383_s1 + $0x230] sm:$0xff]   ;;  %v1123_v21 = vld [vmem:[%s1384_s0 + $0x20] ss:$0 sps:$4 sm:$0xff]  }
  0x1a   :  { %958 = vmatprep.subr.bf16.mxu1 %v1069_v26  ;;  %v849_v11 = vcombine.low %v18_v10, %v18_v10  ;;  %v850_v12 = vcombine.high %v18_v10, %v18_v10  ;;  %v1118_v16 = vld [vmem:[%s1383_s1 + $0x218] sm:$0xff]   ;;  %v842_v23 = vld [vmem:[%s1385_s2] ss:$0 sm:$0xff] }
  0x1b   :  { %937 = vmatpush3.bf16.msra.mxu0 %v1068_v25  ;;  %v1122_v20 = vld [vmem:[%s1383_s1 + $0x238] sm:$0xff]  }
  0x1c   :  { %938 = vmatprep.subr.bf16.mxu0 %v1071_v28 }
  0x1d   :  { %959 = vmatpush3.bf16.msra.mxu1 %v1070_v27 }
  0x1e   :  { %960 = vmatprep.subr.bf16.mxu1 %v1073_v30 }
  0x1f   :  { %939 = vmatpush3.bf16.msra.mxu0 %v1072_v29 }
  0x20   :  { %968 = vmatprep.subr.bf16.mxu0 %v1077_v35 }
  0x21   :  { %961 = vmatpush3.bf16.msra.mxu1 %v1076_v34 }
  0x22   :  { %668 = vmatmul.mubr.bf16.vlgmr.msra.gmra.mrb[0].mxu0 %v843_v32  ;;  %990 = vmatprep.subr.bf16.mxu1 %v1081_v40 }
  0x23   :  { %969 = vmatpush3.bf16.msra.mxu0 %v1080_v39  ;;  %747 = vmatprep.mubr.bf16.mxu0 %v848_v7 }
  0x24   :  { %708 = vmatmul.mubr.bf16.vlgmr.msra.gmra.mrb[0].mxu1 %v845_v37  ;;  %970 = vmatprep.subr.bf16.mxu0 %v1083_v42 }
  0x25   :  { %991 = vmatpush3.bf16.msra.mxu1 %v1082_v41  ;;  %787 = vmatprep.mubr.bf16.mxu1 %v850_v12 }
  0x26   :  { %992 = vmatprep.subr.bf16.mxu1 %v1085_v44 }
  0x27   :  { %971 = vmatpush3.bf16.msra.mxu0 %v1084_v43 }
  0x28   :  { %972 = vmatprep.subr.bf16.mxu0 %v1087_v46 }
  0x29   :  { %993 = vmatpush3.bf16.msra.mxu1 %v1086_v45 }
  0x2a   :  { %994 = vmatprep.subr.bf16.mxu1 %v1089_v48 }
  0x2b   :  { %973 = vmatpush3.bf16.msra.mxu0 %v1088_v47 }
  0x2c   :  { %974 = vmatprep.subr.bf16.mxu0 %v1091_v50 }
  0x2d   :  { %995 = vmatpush3.bf16.msra.mxu1 %v1090_v49 }
  0x2e   :  { %996 = vmatprep.subr.bf16.mxu1 %v1093_v52 }
  0x2f   :  { %975 = vmatpush3.bf16.msra.mxu0 %v1092_v51 }
  0x30   :  { %976 = vmatprep.subr.bf16.mxu0 %v1095_v54 }
  0x31   :  { %997 = vmatpush3.bf16.msra.mxu1 %v1094_v53 }
  0x32   :  { %998 = vmatprep.subr.bf16.mxu1 %v1097_v56 }
  0x33   :  { %977 = vmatpush3.bf16.msra.mxu0 %v1096_v55 }
  0x34   :  { %978 = vmatprep.subr.bf16.mxu0 %v1099_v58 }
  0x35   :  { %999 = vmatpush3.bf16.msra.mxu1 %v1098_v57 }
  0x36   :  { %1000 = vmatprep.subr.bf16.mxu1 %v1101_v60 }
  0x37   :  { %979 = vmatpush3.bf16.msra.mxu0 %v1100_v59 }
  0x38   :  { %980 = vmatprep.subr.bf16.mxu0 %v1103_v62 }
  0x39   :  { %1001 = vmatpush3.bf16.msra.mxu1 %v1102_v61 }
  0x3a   :  { %1002 = vmatprep.subr.bf16.mxu1 %v1105_v0 }
  0x3b   :  { %981 = vmatpush3.bf16.msra.mxu0 %v1104_v63 }
  0x3c   :  { %982 = vmatprep.subr.bf16.mxu0 %v1107_v2 }
  0x3d   :  { %1003 = vmatpush3.bf16.msra.mxu1 %v1106_v1 }
  0x3e   :  { %1004 = vmatprep.subr.bf16.mxu1 %v1109_v4 }
  0x3f   :  { %983 = vmatpush3.bf16.msra.mxu0 %v1108_v3 }
  0x40   :  { %1021 = vmatprep.subr.bf16.mxu0 %v1124_v9 }
  0x41   :  { %1005 = vmatpush3.bf16.msra.mxu1 %v1112_v8 }
  0x42   :  { %748 = vmatmul.mubr.bf16.vlgmr.msra.gmra.mrb[4].mxu0 %v847_v6 }
  0x43   :  { %1022 = vmatpush3.bf16.msra.mxu0 %v1115_v13  ;;  %1037 = vmatprep.mubr.msk.bf16.mxu0 %vm1125_vm0, %v1124_v9 }
  0x44   :  { %788 = vmatmul.mubr.bf16.vlgmr.msra.gmra.mrb[4].mxu1 %v849_v11  ;;  %1023 = vmatprep.subr.bf16.mxu0 %v1124_v9 }
  0x47   :  { %1024 = vmatpush3.bf16.msra.mxu0 %v1116_v14 }
  0x48   :  { %1025 = vmatprep.subr.bf16.mxu0 %v1124_v9 }
  0x4b   :  { %1026 = vmatpush3.bf16.msra.mxu0 %v1117_v15 }
  0x4c   :  { %1027 = vmatprep.subr.bf16.mxu0 %v1124_v9 }
  0x4f   :  { %1028 = vmatpush3.bf16.msra.mxu0 %v1118_v16 }
  0x50   :  { %1029 = vmatprep.subr.bf16.mxu0 %v1124_v9 }
  0x53   :  { %1030 = vmatpush3.bf16.msra.mxu0 %v1119_v17 }
  0x54   :  { %1031 = vmatprep.subr.bf16.mxu0 %v1124_v9 }
  0x57   :  { %1032 = vmatpush3.bf16.msra.mxu0 %v1120_v18 }
  0x58   :  { %1033 = vmatprep.subr.bf16.mxu0 %v1124_v9 }
  0x5b   :  { %1034 = vmatpush3.bf16.msra.mxu0 %v1121_v19 }
  0x5c   :  { %1035 = vmatprep.subr.bf16.mxu0 %v1124_v9 }
  0x5f   :  { %1036 = vmatpush3.bf16.msra.mxu0 %v1122_v20 }
  0x62   :  { %1038 = vmatmul.mubr.bf16.vlgmr.msra.gmra.mrb[8].mxu0 %v1123_v21 }
  0xf5   :  { %v940_v22 = vpop.f32.mrb[0].mxu0 }
  0xf6   :  { %v941_v24 = vpop.f32.mrb[1].mxu0 }
  0xf7   :  { %v942_v25 = vadd.f32 %v941_v24, %v940_v22  ;;  %v943_v26 = vpop.f32.mrb[2].mxu0  ;;  %v962_v27 = vpop.f32.mrb[0].mxu1 }
  0xf8   :  { %v944_v28 = vpop.f32.mrb[3].mxu0  ;;  %v963_v29 = vpop.f32.mrb[1].mxu1 }
  0xf9   :  { %v670_v30 = vadd.f32 %v942_v25, %v842_v23  ;;  %v964_v31 = vadd.f32 %v963_v29, %v962_v27  ;;  %v965_v32 = vpop.f32.mrb[2].mxu1 }
  0xfa   :  { %v966_v33 = vpop.f32.mrb[3].mxu1 }
  0xfb   :  { %v710_v34 = vadd.f32 %v964_v31, %v670_v30 }
 0x115   :  { %v984_v35 = vpop.f32.mrb[4].mxu0 }
 0x116   :  { %v985_v36 = vpop.f32.mrb[5].mxu0 }
 0x117   :  { %v986_v37 = vadd.f32 %v985_v36, %v984_v35  ;;  %v987_v38 = vpop.f32.mrb[6].mxu0  ;;  %v1006_v39 = vpop.f32.mrb[4].mxu1 }
 0x118   :  { %v988_v40 = vpop.f32.mrb[7].mxu0  ;;  %v1007_v41 = vpop.f32.mrb[5].mxu1 }
 0x119   :  { %v750_v42 = vadd.f32 %v986_v37, %v710_v34  ;;  %v1008_v43 = vadd.f32 %v1007_v41, %v1006_v39  ;;  %v1009_v44 = vpop.f32.mrb[6].mxu1 }
 0x11a   :  { %v1010_v45 = vpop.f32.mrb[7].mxu1 }
 0x11b   :  { %v790_v46 = vadd.f32 %v1008_v43, %v750_v42 }
 0x135   :  { %v829_v47 = vpop.f32.mrb[8].mxu0 }
 0x136   :  { %v830_v48 = vadd.f32 %v829_v47, %v790_v46  ;;  %v1039_v49 = vpop.f32.mrb[9].mxu0 }
 0x137   :  { %v832_v50 = vpop.f32.mrb[10].mxu0 }
 0x138   :  { %v835_v51 = vmax.f32 %v830_v48, 0.0  ;;  %v1040_v52 = vpop.f32.mrb[11].mxu0 }
 0x13a   :  { %v836_v53 = vpack.c.bf16 %v835_v51, %v835_v51 }
 0x13c   :  { %837 = vst [vmem:[%s1386_s3] sm:$0xf] %v836_v53 }

// kernel: dqn_forward.7
= control target key start
LH: loop header
LB: loop body
LE: loop exit
PB: predicated region body
PF: predicated region fallthrough
CT: control target
= control target key end

     0   :  { %v864_v1 = vmov 0   ;;  %s1099_s1 = inlined_call_operand.vmem [shape: bf16[128,512], index: 1, kind: input, shape index: {}]   ;;  %s1100_s3 = inlined_call_operand.vmem [shape: bf16[512,128], index: 3, kind: input, shape index: {}]   ;;  %s1101_s0 = inlined_call_operand.vmem [shape: bf16[8,128], index: 0, kind: input, shape index: {}]   ;;  %s1102_s2 = inlined_call_operand.vmem [shape: f32[1,512], index: 2, kind: input, shape index: {}]   ;;  %s1103_s4 = inlined_call_operand.vmem [shape: f32[1,128], index: 4, kind: input, shape index: {}]   ;;  %s1104_s5 = inlined_call_operand.vmem [shape: f32[8,128], index: 5, kind: output, shape index: {}]  }
   0x1   :  { %v784_v0 = vld [vmem:[%s1099_s1 + $0x4] ss:$16 sps:$4 sm:$0xff]   ;;  %268 = vmatprep.mubr.bf16.mxu0 %v864_v1  ;;  %309 = vmatprep.mubr.bf16.mxu1 %v864_v1  ;;  %v786_v2 = vld [vmem:[%s1099_s1 + $0xc] ss:$16 sps:$4 sm:$0xff]   ;;  %v788_v3 = vld [vmem:[%s1099_s1] ss:$16 sps:$4 sm:$0xff]  }
   0x2   :  { %236 = vmatprep.subr.bf16.mxu0 %v784_v0  ;;  %v789_v4 = vld [vmem:[%s1099_s1 + $0x8] ss:$16 sps:$4 sm:$0xff]   ;;  %277 = vmatprep.subr.bf16.mxu1 %v786_v2  ;;  %v790_v5 = vld [vmem:[%s1099_s1 + $0x24] ss:$16 sps:$4 sm:$0xff]   ;;  %v792_v6 = vld [vmem:[%s1099_s1 + $0x2c] ss:$16 sps:$4 sm:$0xff]   ;;  %v56_v2 = vlaneseq }
   0x3   :  { %237 = vmatpush1.bf16.msra.mxu0 %v788_v3  ;;  %278 = vmatpush1.bf16.msra.mxu1 %v789_v4  ;;  %v794_v7 = vld [vmem:[%s1099_s1 + $0x20] ss:$16 sps:$4 sm:$0xff]   ;;  %v795_v8 = vld [vmem:[%s1099_s1 + $0x28] ss:$16 sps:$4 sm:$0xff]   ;;  %v796_v9 = vld [vmem:[%s1099_s1 + $0x44] ss:$16 sps:$4 sm:$0xff]  }
   0x4   :  { %238 = vmatprep.subr.bf16.mxu0 %v790_v5  ;;  %279 = vmatprep.subr.bf16.mxu1 %v792_v6  ;;  %v798_v10 = vld [vmem:[%s1099_s1 + $0x4c] ss:$16 sps:$4 sm:$0xff]   ;;  %v800_v11 = vld [vmem:[%s1099_s1 + $0x40] ss:$16 sps:$4 sm:$0xff]   ;;  %v801_v12 = vld [vmem:[%s1099_s1 + $0x48] ss:$16 sps:$4 sm:$0xff]  }
   0x5   :  { %v802_v13 = vld [vmem:[%s1099_s1 + $0x64] ss:$16 sps:$4 sm:$0xff]   ;;  %v804_v14 = vld [vmem:[%s1099_s1 + $0x6c] ss:$16 sps:$4 sm:$0xff]   ;;  %v806_v15 = vld [vmem:[%s1099_s1 + $0x60] ss:$16 sps:$4 sm:$0xff]  }
   0x6   :  { %v807_v16 = vld [vmem:[%s1099_s1 + $0x68] ss:$16 sps:$4 sm:$0xff]   ;;  %v808_v17 = vld [vmem:[%s1099_s1 + $0x84] ss:$16 sps:$4 sm:$0xff]   ;;  %v810_v18 = vld [vmem:[%s1099_s1 + $0x8c] ss:$16 sps:$4 sm:$0xff]  }
   0x7   :  { %239 = vmatpush1.bf16.msra.mxu0 %v794_v7  ;;  %280 = vmatpush1.bf16.msra.mxu1 %v795_v8  ;;  %v812_v19 = vld [vmem:[%s1099_s1 + $0x80] ss:$16 sps:$4 sm:$0xff]   ;;  %v813_v20 = vld [vmem:[%s1099_s1 + $0x88] ss:$16 sps:$4 sm:$0xff]   ;;  %v814_v21 = vld [vmem:[%s1099_s1 + $0xa4] ss:$16 sps:$4 sm:$0xff]  }
   0x8   :  { %240 = vmatprep.subr.bf16.mxu0 %v796_v9  ;;  %281 = vmatprep.subr.bf16.mxu1 %v798_v10  ;;  %v816_v22 = vld [vmem:[%s1099_s1 + $0xac] ss:$16 sps:$4 sm:$0xff]   ;;  %v818_v23 = vld [vmem:[%s1099_s1 + $0xa0] ss:$16 sps:$4 sm:$0xff]   ;;  %v819_v24 = vld [vmem:[%s1099_s1 + $0xa8] ss:$16 sps:$4 sm:$0xff]  }
   0x9   :  { %v820_v25 = vld [vmem:[%s1099_s1 + $0xc4] ss:$16 sps:$4 sm:$0xff]   ;;  %v822_v26 = vld [vmem:[%s1099_s1 + $0xcc] ss:$16 sps:$4 sm:$0xff]   ;;  %v824_v27 = vld [vmem:[%s1099_s1 + $0xc0] ss:$16 sps:$4 sm:$0xff]  }
   0xa   :  { %v825_v28 = vld [vmem:[%s1099_s1 + $0xc8] ss:$16 sps:$4 sm:$0xff]   ;;  %v826_v29 = vld [vmem:[%s1099_s1 + $0xe4] ss:$16 sps:$4 sm:$0xff]   ;;  %v828_v30 = vld [vmem:[%s1099_s1 + $0xec] ss:$16 sps:$4 sm:$0xff]  }
   0xb   :  { %241 = vmatpush1.bf16.msra.mxu0 %v800_v11  ;;  %282 = vmatpush1.bf16.msra.mxu1 %v801_v12  ;;  %v830_v31 = vld [vmem:[%s1099_s1 + $0xe0] ss:$16 sps:$4 sm:$0xff]   ;;  %v831_v32 = vld [vmem:[%s1099_s1 + $0xe8] ss:$16 sps:$4 sm:$0xff]   ;;  %v57_v3 = vshrl.u32 %v56_v2, 7 }
   0xc   :  { %242 = vmatprep.subr.bf16.mxu0 %v802_v13  ;;  %283 = vmatprep.subr.bf16.mxu1 %v804_v14  ;;  %v832_v33 = vld [vmem:[%s1100_s3 + $0x40] sm:$0xff]   ;;  %v836_v38 = vld [vmem:[%s1100_s3 + $0x48] sm:$0xff]   ;;  %v840_v42 = vld [vmem:[%s1100_s3 + $0x50] sm:$0xff]  }
   0xd   :  { %v833_v34 = vld [vmem:[%s1100_s3 + $0xc0] sm:$0xff]   ;;  %v837_v39 = vld [vmem:[%s1100_s3 + $0xc8] sm:$0xff]   ;;  %v841_v43 = vld [vmem:[%s1100_s3 + $0xd0] sm:$0xff]   ;;  %v58_v4 = vsub.s32 0, %v57_v3  ;;  %v66_v5 = vsub.s32 2, %v57_v3  ;;  %v62_v7 = vsub.s32 1, %v57_v3 }
   0xe   :  { %v21_v35 = vld [vmem:[%s1101_s0] sm:$0xf]  ;;  %v838_v40 = vld [vmem:[%s1100_s3 + $0x8] sm:$0xff]   ;;  %v842_v44 = vld [vmem:[%s1100_s3 + $0x10] sm:$0xff]   ;;  %v70_v8 = vsub.s32 3, %v57_v3 }
   0xf   :  { %243 = vmatpush1.bf16.msra.mxu0 %v806_v15  ;;  %284 = vmatpush1.bf16.msra.mxu1 %v807_v16  ;;  %v834_v36 = vld [vmem:[%s1100_s3] sm:$0xff]   ;;  %v839_v41 = vld [vmem:[%s1100_s3 + $0x88] sm:$0xff]   ;;  %v843_v45 = vld [vmem:[%s1100_s3 + $0x90] sm:$0xff]  }
  0x10   :  { %244 = vmatprep.subr.bf16.mxu0 %v808_v17  ;;  %285 = vmatprep.subr.bf16.mxu1 %v810_v18  ;;  %v835_v37 = vld [vmem:[%s1100_s3 + $0x80] sm:$0xff]   ;;  %v844_v46 = vld [vmem:[%s1100_s3 + $0x58] sm:$0xff]   ;;  %v852_v54 = vld [vmem:[%s1100_s3 + $0x68] sm:$0xff]  }
  0x11   :  { %v845_v47 = vld [vmem:[%s1100_s3 + $0xd8] sm:$0xff]   ;;  %v848_v50 = vld [vmem:[%s1100_s3 + $0x60] sm:$0xff]   ;;  %v853_v55 = vld [vmem:[%s1100_s3 + $0xe8] sm:$0xff]  }
  0x12   :  { %v846_v48 = vld [vmem:[%s1100_s3 + $0x18] sm:$0xff]   ;;  %v849_v51 = vld [vmem:[%s1100_s3 + $0xe0] sm:$0xff]   ;;  %v854_v56 = vld [vmem:[%s1100_s3 + $0x28] sm:$0xff]  }
  0x13   :  { %245 = vmatpush1.bf16.msra.mxu0 %v812_v19  ;;  %286 = vmatpush1.bf16.msra.mxu1 %v813_v20  ;;  %v847_v49 = vld [vmem:[%s1100_s3 + $0x98] sm:$0xff]   ;;  %v850_v52 = vld [vmem:[%s1100_s3 + $0x20] sm:$0xff]   ;;  %v855_v57 = vld [vmem:[%s1100_s3 + $0xa8] sm:$0xff]  }
  0x14   :  { %246 = vmatprep.subr.bf16.mxu0 %v814_v21  ;;  %287 = vmatprep.subr.bf16.mxu1 %v816_v22  ;;  %v851_v53 = vld [vmem:[%s1100_s3 + $0xa0] sm:$0xff]   ;;  %v856_v58 = vld [vmem:[%s1100_s3 + $0x70] sm:$0xff]   ;;  %v860_v62 = vld [vmem:[%s1100_s3 + $0x78] sm:$0xff]  }
  0x15   :  { %v857_v59 = vld [vmem:[%s1100_s3 + $0xf0] sm:$0xff]   ;;  %v861_v63 = vld [vmem:[%s1100_s3 + $0xf8] sm:$0xff]   ;;  %v54_v6 = vld [vmem:[%s1102_s2] sm:$0xf] }
  0x16   :  { %v858_v60 = vld [vmem:[%s1100_s3 + $0x30] sm:$0xff]   ;;  %v862_v0 = vld [vmem:[%s1100_s3 + $0x38] sm:$0xff]   ;;  %v59_v9 = vrot.slane %v54_v6, %v58_v4  ;;  %v67_v10 = vrot.slane %v54_v6, %v66_v5  ;;  %v63_v11 = vrot.slane %v54_v6, %v62_v7  ;;  %v71_v12 = vrot.slane %v54_v6, %v70_v8 }
  0x17   :  { %247 = vmatpush1.bf16.msra.mxu0 %v818_v23  ;;  %288 = vmatpush1.bf16.msra.mxu1 %v819_v24  ;;  %v859_v61 = vld [vmem:[%s1100_s3 + $0xb0] sm:$0xff]   ;;  %v863_v1 = vld [vmem:[%s1100_s3 + $0xb8] sm:$0xff]  }
  0x18   :  { %248 = vmatprep.subr.bf16.mxu0 %v820_v25  ;;  %289 = vmatprep.subr.bf16.mxu1 %v822_v26 }
  0x1b   :  { %249 = vmatpush1.bf16.msra.mxu0 %v824_v27  ;;  %290 = vmatpush1.bf16.msra.mxu1 %v825_v28 }
  0x1c   :  { %250 = vmatprep.subr.bf16.mxu0 %v826_v29  ;;  %291 = vmatprep.subr.bf16.mxu1 %v828_v30 }
  0x1f   :  { %251 = vmatpush1.bf16.msra.mxu0 %v830_v31  ;;  %292 = vmatpush1.bf16.msra.mxu1 %v831_v32 }
  0x20   :  { %739 = vmatprep.subr.bf16.mxu0 %v832_v33  ;;  %761 = vmatprep.subr.bf16.mxu1 %v833_v34 }
  0x22   :  { %269 = vmatmul.mubr.bf16.vlgmr.msra.gmra.mrb[0].mxu0 %v21_v35  ;;  %310 = vmatmul.mubr.bf16.vlgmr.msra.gmra.mrb[0].mxu1 %v21_v35  ;;  %v706_v35 = vld [vmem:[%s1103_s4] ss:$0 sm:$0xff] }
  0x23   :  { %740 = vmatpush3.bf16.msra.mxu0 %v834_v36  ;;  %762 = vmatpush3.bf16.msra.mxu1 %v835_v37 }
  0x24   :  { %741 = vmatprep.subr.bf16.mxu0 %v836_v38  ;;  %763 = vmatprep.subr.bf16.mxu1 %v837_v39 }
  0x27   :  { %742 = vmatpush3.bf16.msra.mxu0 %v838_v40  ;;  %764 = vmatpush3.bf16.msra.mxu1 %v839_v41 }
  0x28   :  { %743 = vmatprep.subr.bf16.mxu0 %v840_v42  ;;  %765 = vmatprep.subr.bf16.mxu1 %v841_v43 }
  0x2b   :  { %744 = vmatpush3.bf16.msra.mxu0 %v842_v44  ;;  %766 = vmatpush3.bf16.msra.mxu1 %v843_v45 }
  0x2c   :  { %745 = vmatprep.subr.bf16.mxu0 %v844_v46  ;;  %767 = vmatprep.subr.bf16.mxu1 %v845_v47 }
  0x2f   :  { %746 = vmatpush3.bf16.msra.mxu0 %v846_v48  ;;  %768 = vmatpush3.bf16.msra.mxu1 %v847_v49 }
  0x30   :  { %747 = vmatprep.subr.bf16.mxu0 %v848_v50  ;;  %769 = vmatprep.subr.bf16.mxu1 %v849_v51 }
  0x33   :  { %748 = vmatpush3.bf16.msra.mxu0 %v850_v52  ;;  %770 = vmatpush3.bf16.msra.mxu1 %v851_v53 }
  0x34   :  { %749 = vmatprep.subr.bf16.mxu0 %v852_v54  ;;  %771 = vmatprep.subr.bf16.mxu1 %v853_v55 }
  0x37   :  { %750 = vmatpush3.bf16.msra.mxu0 %v854_v56  ;;  %772 = vmatpush3.bf16.msra.mxu1 %v855_v57 }
  0x38   :  { %751 = vmatprep.subr.bf16.mxu0 %v856_v58  ;;  %773 = vmatprep.subr.bf16.mxu1 %v857_v59 }
  0x3b   :  { %752 = vmatpush3.bf16.msra.mxu0 %v858_v60  ;;  %774 = vmatpush3.bf16.msra.mxu1 %v859_v61 }
  0x3c   :  { %753 = vmatprep.subr.bf16.mxu0 %v860_v62  ;;  %775 = vmatprep.subr.bf16.mxu1 %v861_v63 }
  0x3f   :  { %754 = vmatpush3.bf16.msra.mxu0 %v862_v0  ;;  %776 = vmatpush3.bf16.msra.mxu1 %v863_v1 }
  0xf5   :  { %v270_v13 = vpop.f32.mrb[0].mxu0  ;;  %v311_v14 = vpop.f32.mrb[0].mxu1 }
  0xf6   :  { %v271_v15 = vadd.f32 %v270_v13, %v59_v9  ;;  %v312_v16 = vadd.f32 %v311_v14, %v67_v10  ;;  %v272_v17 = vpop.f32.mrb[1].mxu0  ;;  %v313_v18 = vpop.f32.mrb[1].mxu1 }
  0xf7   :  { %v273_v19 = vadd.f32 %v272_v17, %v63_v11  ;;  %v314_v20 = vadd.f32 %v313_v18, %v71_v12  ;;  %v274_v21 = vpop.f32.mrb[2].mxu0  ;;  %v315_v22 = vpop.f32.mrb[2].mxu1 }
  0xf8   :  { %v318_v23 = vmax.f32 %v271_v15, 0.0  ;;  %v320_v24 = vmax.f32 %v312_v16, 0.0  ;;  %v275_v25 = vpop.f32.mrb[3].mxu0  ;;  %v316_v26 = vpop.f32.mrb[3].mxu1 }
  0xf9   :  { %v319_v27 = vmax.f32 %v273_v19, 0.0  ;;  %v321_v28 = vmax.f32 %v314_v20, 0.0 }
  0xfa   :  { %v324_v29 = vpack.c.bf16 %v320_v24, %v320_v24  ;;  %v322_v32 = vpack.c.bf16 %v318_v23, %v318_v23 }
  0xfb   :  { %v323_v30 = vpack.c.bf16 %v319_v27, %v319_v27  ;;  %v325_v31 = vpack.c.bf16 %v321_v28, %v321_v28 }
  0xfd   :  { %621 = vmatprep.mubr.bf16.mxu0 %v323_v30  ;;  %661 = vmatprep.mubr.bf16.mxu1 %v325_v31 }
  0xfe   :  { %622 = vmatmul.mubr.bf16.vlgmr.msra.gmra.mrb[4].mxu0 %v322_v32  ;;  %662 = vmatmul.mubr.bf16.vlgmr.msra.gmra.mrb[4].mxu1 %v324_v29 }
 0x1d1   :  { %v755_v33 = vpop.f32.mrb[4].mxu0  ;;  %v777_v34 = vpop.f32.mrb[4].mxu1 }
 0x1d2   :  { %v756_v36 = vpop.f32.mrb[5].mxu0  ;;  %v778_v37 = vpop.f32.mrb[5].mxu1 }
 0x1d3   :  { %v757_v38 = vadd.f32 %v756_v36, %v755_v33  ;;  %v779_v39 = vadd.f32 %v778_v37, %v777_v34  ;;  %v758_v40 = vpop.f32.mrb[6].mxu0  ;;  %v780_v41 = vpop.f32.mrb[6].mxu1 }
 0x1d4   :  { %v759_v42 = vpop.f32.mrb[7].mxu0  ;;  %v781_v43 = vpop.f32.mrb[7].mxu1 }
 0x1d5   :  { %v624_v44 = vadd.f32 %v757_v38, %v706_v35 }
 0x1d7   :  { %v664_v45 = vadd.f32 %v779_v39, %v624_v44 }
 0x1d9   :  { %669 = vst [vmem:[%s1104_s5] sm:$0xff] %v664_v45 }

// kernel: dqn_forward.5
= control target key start
LH: loop header
LB: loop body
LE: loop exit
PB: predicated region body
PF: predicated region fallthrough
CT: control target
= control target key end

     0   :  { %s2638_s1 = inlined_call_operand.vmem [shape: bf16[2048,128], index: 1, kind: input, shape index: {}]   ;;  %s2639_s0 = inlined_call_operand.vmem [shape: bf16[24,2048], index: 0, kind: input, shape index: {}]   ;;  %s2640_s2 = inlined_call_operand.vmem [shape: f32[1,128], index: 2, kind: input, shape index: {}]   ;;  %s2641_s3 = inlined_call_operand.vmem [shape: bf16[24,128], index: 3, kind: output, shape index: {}]  }
   0x1   :  { %v2009_v0 = vld [vmem:[%s2638_s1 + $0x40] sm:$0xff]   ;;  %v2013_v4 = vld [vmem:[%s2638_s1 + $0x48] sm:$0xff]   ;;  %v2017_v8 = vld [vmem:[%s2638_s1 + $0x50] sm:$0xff]  }
   0x2   :  { %v2010_v1 = vld [vmem:[%s2638_s1 + $0xc0] sm:$0xff]   ;;  %1785 = vmatprep.subr.bf16.mxu0 %v2009_v0  ;;  %v2014_v5 = vld [vmem:[%s2638_s1 + $0xc8] sm:$0xff]   ;;  %v2018_v9 = vld [vmem:[%s2638_s1 + $0xd0] sm:$0xff]  }
   0x3   :  { %v2011_v2 = vld [vmem:[%s2638_s1] sm:$0xff]   ;;  %1813 = vmatprep.subr.bf16.mxu1 %v2010_v1  ;;  %v2015_v6 = vld [vmem:[%s2638_s1 + $0x8] sm:$0xff]   ;;  %v2019_v10 = vld [vmem:[%s2638_s1 + $0x10] sm:$0xff]  }
   0x4   :  { %v2012_v3 = vld [vmem:[%s2638_s1 + $0x80] sm:$0xff]   ;;  %1786 = vmatpush3.bf16.msra.mxu0 %v2011_v2  ;;  %v2016_v7 = vld [vmem:[%s2638_s1 + $0x88] sm:$0xff]   ;;  %v2020_v11 = vld [vmem:[%s2638_s1 + $0x90] sm:$0xff]  }
   0x5   :  { %1814 = vmatpush3.bf16.msra.mxu1 %v2012_v3  ;;  %1787 = vmatprep.subr.bf16.mxu0 %v2013_v4  ;;  %v2021_v12 = vld [vmem:[%s2638_s1 + $0x58] sm:$0xff]   ;;  %v2025_v16 = vld [vmem:[%s2638_s1 + $0x60] sm:$0xff]   ;;  %v2029_v20 = vld [vmem:[%s2638_s1 + $0x68] sm:$0xff]  }
   0x6   :  { %1815 = vmatprep.subr.bf16.mxu1 %v2014_v5  ;;  %v2022_v13 = vld [vmem:[%s2638_s1 + $0xd8] sm:$0xff]   ;;  %v2026_v17 = vld [vmem:[%s2638_s1 + $0xe0] sm:$0xff]   ;;  %v2030_v21 = vld [vmem:[%s2638_s1 + $0xe8] sm:$0xff]  }
   0x7   :  { %v2023_v14 = vld [vmem:[%s2638_s1 + $0x18] sm:$0xff]   ;;  %v2027_v18 = vld [vmem:[%s2638_s1 + $0x20] sm:$0xff]   ;;  %v2031_v22 = vld [vmem:[%s2638_s1 + $0x28] sm:$0xff]  }
   0x8   :  { %1788 = vmatpush3.bf16.msra.mxu0 %v2015_v6  ;;  %v2024_v15 = vld [vmem:[%s2638_s1 + $0x98] sm:$0xff]   ;;  %v2028_v19 = vld [vmem:[%s2638_s1 + $0xa0] sm:$0xff]   ;;  %v2032_v23 = vld [vmem:[%s2638_s1 + $0xa8] sm:$0xff]  }
   0x9   :  { %1816 = vmatpush3.bf16.msra.mxu1 %v2016_v7  ;;  %1789 = vmatprep.subr.bf16.mxu0 %v2017_v8  ;;  %v2033_v24 = vld [vmem:[%s2638_s1 + $0x70] sm:$0xff]   ;;  %v2037_v28 = vld [vmem:[%s2638_s1 + $0x78] sm:$0xff]   ;;  %v15_v32 = vld [vmem:[%s2639_s0] sm:$0xff] }
   0xa   :  { %1817 = vmatprep.subr.bf16.mxu1 %v2018_v9  ;;  %v2034_v25 = vld [vmem:[%s2638_s1 + $0xf0] sm:$0xff]   ;;  %v2038_v29 = vld [vmem:[%s2638_s1 + $0xf8] sm:$0xff]   ;;  %v23_v33 = vld [vmem:[%s2639_s0 + $0x40] sm:$0xff] }
   0xb   :  { %v2035_v26 = vld [vmem:[%s2638_s1 + $0x30] sm:$0xff]   ;;  %v2039_v30 = vld [vmem:[%s2638_s1 + $0x38] sm:$0xff]   ;;  %v16_v34 = vld [vmem:[%s2639_s0 + $0x8] sm:$0xff]  ;;  %v1614_v35 = vcombine.low %v15_v32, %v23_v33  ;;  %v1615_v36 = vcombine.high %v15_v32, %v23_v33 }
   0xc   :  { %1790 = vmatpush3.bf16.msra.mxu0 %v2019_v10  ;;  %v2036_v27 = vld [vmem:[%s2638_s1 + $0xb0] sm:$0xff]   ;;  %v2040_v31 = vld [vmem:[%s2638_s1 + $0xb8] sm:$0xff]   ;;  %v24_v37 = vld [vmem:[%s2639_s0 + $0x48] sm:$0xff] }
   0xd   :  { %1818 = vmatpush3.bf16.msra.mxu1 %v2020_v11  ;;  %1791 = vmatprep.subr.bf16.mxu0 %v2021_v12  ;;  %v1616_v38 = vcombine.low %v16_v34, %v24_v37  ;;  %v1617_v39 = vcombine.high %v16_v34, %v24_v37  ;;  %v2041_v40 = vld [vmem:[%s2638_s1 + $0x140] sm:$0xff]   ;;  %v2045_v44 = vld [vmem:[%s2638_s1 + $0x148] sm:$0xff]   ;;  %v2049_v48 = vld [vmem:[%s2638_s1 + $0x150] sm:$0xff]  }
   0xe   :  { %1819 = vmatprep.subr.bf16.mxu1 %v2022_v13  ;;  %1238 = vmatprep.mubr.bf16.mxu0 %v1615_v36  ;;  %v2042_v41 = vld [vmem:[%s2638_s1 + $0x1c0] sm:$0xff]   ;;  %v2046_v45 = vld [vmem:[%s2638_s1 + $0x1c8] sm:$0xff]   ;;  %v2050_v49 = vld [vmem:[%s2638_s1 + $0x1d0] sm:$0xff]  }
   0xf   :  { %1286 = vmatprep.mubr.bf16.mxu1 %v1617_v39  ;;  %v2043_v42 = vld [vmem:[%s2638_s1 + $0x100] sm:$0xff]   ;;  %v2047_v46 = vld [vmem:[%s2638_s1 + $0x108] sm:$0xff]   ;;  %v2051_v50 = vld [vmem:[%s2638_s1 + $0x110] sm:$0xff]  }
  0x10   :  { %1792 = vmatpush3.bf16.msra.mxu0 %v2023_v14  ;;  %v2044_v43 = vld [vmem:[%s2638_s1 + $0x180] sm:$0xff]   ;;  %v2048_v47 = vld [vmem:[%s2638_s1 + $0x188] sm:$0xff]   ;;  %v2052_v51 = vld [vmem:[%s2638_s1 + $0x190] sm:$0xff]  }
  0x11   :  { %1820 = vmatpush3.bf16.msra.mxu1 %v2024_v15  ;;  %1793 = vmatprep.subr.bf16.mxu0 %v2025_v16  ;;  %v2053_v52 = vld [vmem:[%s2638_s1 + $0x158] sm:$0xff]   ;;  %v2057_v56 = vld [vmem:[%s2638_s1 + $0x160] sm:$0xff]   ;;  %v2061_v60 = vld [vmem:[%s2638_s1 + $0x168] sm:$0xff]  }
  0x12   :  { %1821 = vmatprep.subr.bf16.mxu1 %v2026_v17  ;;  %v2054_v53 = vld [vmem:[%s2638_s1 + $0x1d8] sm:$0xff]   ;;  %v2058_v57 = vld [vmem:[%s2638_s1 + $0x1e0] sm:$0xff]   ;;  %v2062_v61 = vld [vmem:[%s2638_s1 + $0x1e8] sm:$0xff]  }
  0x13   :  { %v2055_v54 = vld [vmem:[%s2638_s1 + $0x118] sm:$0xff]   ;;  %v2059_v58 = vld [vmem:[%s2638_s1 + $0x120] sm:$0xff]   ;;  %v2064_v0 = vld [vmem:[%s2638_s1 + $0x128] sm:$0xff]  }
  0x14   :  { %1794 = vmatpush3.bf16.msra.mxu0 %v2027_v18  ;;  %v2056_v55 = vld [vmem:[%s2638_s1 + $0x198] sm:$0xff]   ;;  %v2060_v59 = vld [vmem:[%s2638_s1 + $0x1a0] sm:$0xff]   ;;  %v2065_v2 = vld [vmem:[%s2638_s1 + $0x1a8] sm:$0xff]  }
  0x15   :  { %1822 = vmatpush3.bf16.msra.mxu1 %v2028_v19  ;;  %1795 = vmatprep.subr.bf16.mxu0 %v2029_v20  ;;  %v31_v62 = vld [vmem:[%s2639_s0 + $0x80] sm:$0xff]  ;;  %v32_v3 = vld [vmem:[%s2639_s0 + $0x88] sm:$0xff]  ;;  %v2069_v6 = vld [vmem:[%s2638_s1 + $0x170] sm:$0xff]  }
  0x16   :  { %1823 = vmatprep.subr.bf16.mxu1 %v2030_v21  ;;  %v1631_v63 = vcombine.high %v31_v62, %v31_v62  ;;  %v1630_v1 = vcombine.low %v31_v62, %v31_v62  ;;  %v1633_v4 = vcombine.high %v32_v3, %v32_v3  ;;  %v1632_v5 = vcombine.low %v32_v3, %v32_v3  ;;  %v2070_v7 = vld [vmem:[%s2638_s1 + $0x1f0] sm:$0xff]   ;;  %v2073_v10 = vld [vmem:[%s2638_s1 + $0x178] sm:$0xff]   ;;  %v20_v62 = vld [vmem:[%s2639_s0 + $0x28] sm:$0xff] }
  0x17   :  { %v2071_v8 = vld [vmem:[%s2638_s1 + $0x130] sm:$0xff]   ;;  %v2074_v11 = vld [vmem:[%s2638_s1 + $0x1f8] sm:$0xff]  }
  0x18   :  { %1796 = vmatpush3.bf16.msra.mxu0 %v2031_v22  ;;  %v2072_v9 = vld [vmem:[%s2638_s1 + $0x1b0] sm:$0xff]   ;;  %v2075_v12 = vld [vmem:[%s2638_s1 + $0x138] sm:$0xff]   ;;  %v2077_v22 = vld [vmem:[%s2638_s1 + $0x240] sm:$0xff]  }
  0x19   :  { %1824 = vmatpush3.bf16.msra.mxu1 %v2032_v23  ;;  %1797 = vmatprep.subr.bf16.mxu0 %v2033_v24  ;;  %v2076_v13 = vld [vmem:[%s2638_s1 + $0x1b8] sm:$0xff]   ;;  %v17_v14 = vld [vmem:[%s2639_s0 + $0x10] sm:$0xff]  ;;  %v2078_v23 = vld [vmem:[%s2638_s1 + $0x2c0] sm:$0xff]  }
  0x1a   :  { %1825 = vmatprep.subr.bf16.mxu1 %v2034_v25  ;;  %v25_v15 = vld [vmem:[%s2639_s0 + $0x50] sm:$0xff]  ;;  %v18_v16 = vld [vmem:[%s2639_s0 + $0x18] sm:$0xff]  ;;  %v2079_v24 = vld [vmem:[%s2638_s1 + $0x200] sm:$0xff]  }
  0x1b   :  { %v1618_v17 = vcombine.low %v17_v14, %v25_v15  ;;  %v1619_v18 = vcombine.high %v17_v14, %v25_v15  ;;  %v26_v19 = vld [vmem:[%s2639_s0 + $0x58] sm:$0xff]  ;;  %v2080_v25 = vld [vmem:[%s2638_s1 + $0x280] sm:$0xff]   ;;  %v2087_v33 = vld [vmem:[%s2638_s1 + $0x250] sm:$0xff]  }
  0x1c   :  { %1798 = vmatpush3.bf16.msra.mxu0 %v2035_v26  ;;  %v1620_v20 = vcombine.low %v18_v16, %v26_v19  ;;  %v1621_v21 = vcombine.high %v18_v16, %v26_v19  ;;  %v2081_v26 = vld [vmem:[%s2638_s1 + $0x248] sm:$0xff]   ;;  %v2088_v34 = vld [vmem:[%s2638_s1 + $0x2d0] sm:$0xff]  }
  0x1d   :  { %1826 = vmatpush3.bf16.msra.mxu1 %v2036_v27  ;;  %1799 = vmatprep.subr.bf16.mxu0 %v2037_v28  ;;  %v2082_v27 = vld [vmem:[%s2638_s1 + $0x2c8] sm:$0xff]   ;;  %v2090_v37 = vld [vmem:[%s2638_s1 + $0x210] sm:$0xff]  }
  0x1e   :  { %1827 = vmatprep.subr.bf16.mxu1 %v2038_v29  ;;  %v2083_v28 = vld [vmem:[%s2638_s1 + $0x208] sm:$0xff]   ;;  %v2091_v39 = vld [vmem:[%s2638_s1 + $0x290] sm:$0xff]  }
  0x1f   :  { %v2084_v29 = vld [vmem:[%s2638_s1 + $0x288] sm:$0xff]   ;;  %v2123_v15 = vld [vmem:[%s2638_s1 + $0x350] sm:$0xff]  }
  0x20   :  { %1800 = vmatpush3.bf16.msra.mxu0 %v2039_v30  ;;  %v33_v30 = vld [vmem:[%s2639_s0 + $0x90] sm:$0xff] }
  0x21   :  { %1828 = vmatpush3.bf16.msra.mxu1 %v2040_v31  ;;  %1841 = vmatprep.subr.bf16.mxu0 %v2041_v40  ;;  %v1635_v31 = vcombine.high %v33_v30, %v33_v30  ;;  %v1634_v32 = vcombine.low %v33_v30, %v33_v30  ;;  %v2093_v40 = vld [vmem:[%s2638_s1 + $0x258] sm:$0xff]   ;;  %v2124_v16 = vld [vmem:[%s2638_s1 + $0x3d0] sm:$0xff]   ;;  %v2137_v30 = vld [vmem:[%s2638_s1 + $0x368] sm:$0xff]  }
  0x22   :  { %1869 = vmatprep.subr.bf16.mxu1 %v2042_v41  ;;  %v2094_v41 = vld [vmem:[%s2638_s1 + $0x2d8] sm:$0xff]   ;;  %v2126_v19 = vld [vmem:[%s2638_s1 + $0x310] sm:$0xff]  }
  0x23   :  { %1239 = vmatmul.mubr.bf16.vlgmr.msra.gmra.mrb[0].mxu0 %v1614_v35  ;;  %v34_v35 = vld [vmem:[%s2639_s0 + $0x98] sm:$0xff] }
  0x24   :  { %1287 = vmatmul.mubr.bf16.vlgmr.msra.gmra.mrb[0].mxu1 %v1616_v38  ;;  %1842 = vmatpush3.bf16.msra.mxu0 %v2043_v42  ;;  %v1637_v36 = vcombine.high %v34_v35, %v34_v35  ;;  %v1636_v38 = vcombine.low %v34_v35, %v34_v35  ;;  %v2095_v42 = vld [vmem:[%s2638_s1 + $0x218] sm:$0xff]   ;;  %v2142_v35 = vld [vmem:[%s2638_s1 + $0x3f0] sm:$0xff]  }
  0x25   :  { %1870 = vmatpush3.bf16.msra.mxu1 %v2044_v43  ;;  %1843 = vmatprep.subr.bf16.mxu0 %v2045_v44  ;;  %v2096_v43 = vld [vmem:[%s2638_s1 + $0x298] sm:$0xff]   ;;  %v2097_v44 = vld [vmem:[%s2638_s1 + $0x260] sm:$0xff]  }
  0x26   :  { %1871 = vmatprep.subr.bf16.mxu1 %v2046_v45  ;;  %1246 = vmatprep.mubr.bf16.mxu0 %v1631_v63  ;;  %v2098_v45 = vld [vmem:[%s2638_s1 + $0x2e0] sm:$0xff]  }
  0x27   :  { %1294 = vmatprep.mubr.bf16.mxu1 %v1633_v4  ;;  %v2113_v4 = vld [vmem:[%s2638_s1 + $0x340] sm:$0xff]  }
  0x28   :  { %1844 = vmatpush3.bf16.msra.mxu0 %v2047_v46  ;;  %v2099_v46 = vld [vmem:[%s2638_s1 + $0x220] sm:$0xff]  }
  0x29   :  { %1872 = vmatpush3.bf16.msra.mxu1 %v2048_v47  ;;  %1845 = vmatprep.subr.bf16.mxu0 %v2049_v48  ;;  %v2100_v47 = vld [vmem:[%s2638_s1 + $0x2a0] sm:$0xff]   ;;  %v2101_v48 = vld [vmem:[%s2638_s1 + $0x268] sm:$0xff]  }
  0x2a   :  { %1873 = vmatprep.subr.bf16.mxu1 %v2050_v49  ;;  %v2102_v49 = vld [vmem:[%s2638_s1 + $0x2e8] sm:$0xff]  }
  0x2b   :  { %1247 = vmatmul.mubr.bf16.gmra.mrb[4].mxu0 %v1630_v1  ;;  %v28_v1 = vld [vmem:[%s2639_s0 + $0x68] sm:$0xff] }
  0x2c   :  { %1846 = vmatpush3.bf16.msra.mxu0 %v2051_v50  ;;  %1295 = vmatmul.mubr.bf16.gmra.mrb[4].mxu1 %v1632_v5  ;;  %v2103_v50 = vld [vmem:[%s2638_s1 + $0x228] sm:$0xff]   ;;  %v1625_v3 = vcombine.high %v20_v62, %v28_v1  ;;  %v2114_v5 = vld [vmem:[%s2638_s1 + $0x3c0] sm:$0xff]  }
  0x2d   :  { %1874 = vmatpush3.bf16.msra.mxu1 %v2052_v51  ;;  %1847 = vmatprep.subr.bf16.mxu0 %v2053_v52  ;;  %v2104_v51 = vld [vmem:[%s2638_s1 + $0x2a8] sm:$0xff]   ;;  %v2105_v52 = vld [vmem:[%s2638_s1 + $0x270] sm:$0xff]  }
  0x2e   :  { %1875 = vmatprep.subr.bf16.mxu1 %v2054_v53  ;;  %1334 = vmatprep.mubr.bf16.mxu0 %v1619_v18  ;;  %v2106_v53 = vld [vmem:[%s2638_s1 + $0x2f0] sm:$0xff]  }
  0x2f   :  { %1382 = vmatprep.mubr.bf16.mxu1 %v1621_v21  ;;  %v2127_v21 = vld [vmem:[%s2638_s1 + $0x390] sm:$0xff]  }
  0x30   :  { %1848 = vmatpush3.bf16.msra.mxu0 %v2055_v54  ;;  %v2107_v54 = vld [vmem:[%s2638_s1 + $0x230] sm:$0xff]  }
  0x31   :  { %1876 = vmatpush3.bf16.msra.mxu1 %v2056_v55  ;;  %1849 = vmatprep.subr.bf16.mxu0 %v2057_v56  ;;  %v2108_v55 = vld [vmem:[%s2638_s1 + $0x2b0] sm:$0xff]   ;;  %v2109_v56 = vld [vmem:[%s2638_s1 + $0x278] sm:$0xff]  }
  0x32   :  { %1877 = vmatprep.subr.bf16.mxu1 %v2058_v57  ;;  %v2110_v57 = vld [vmem:[%s2638_s1 + $0x2f8] sm:$0xff]  }
  0x34   :  { %1850 = vmatpush3.bf16.msra.mxu0 %v2059_v58  ;;  %v2111_v58 = vld [vmem:[%s2638_s1 + $0x238] sm:$0xff]  }
  0x35   :  { %1878 = vmatpush3.bf16.msra.mxu1 %v2060_v59  ;;  %1851 = vmatprep.subr.bf16.mxu0 %v2061_v60  ;;  %v2112_v59 = vld [vmem:[%s2638_s1 + $0x2b8] sm:$0xff]   ;;  %v19_v60 = vld [vmem:[%s2639_s0 + $0x20] sm:$0xff] }
  0x36   :  { %1879 = vmatprep.subr.bf16.mxu1 %v2062_v61  ;;  %v27_v61 = vld [vmem:[%s2639_s0 + $0x60] sm:$0xff] }
  0x37   :  { %v1622_v63 = vcombine.low %v19_v60, %v27_v61 }
  0x38   :  { %1852 = vmatpush3.bf16.msra.mxu0 %v2064_v0  ;;  %v1623_v0 = vcombine.high %v19_v60, %v27_v61 }
  0x39   :  { %1880 = vmatpush3.bf16.msra.mxu1 %v2065_v2  ;;  %1853 = vmatprep.subr.bf16.mxu0 %v2069_v6  ;;  %v1624_v2 = vcombine.low %v20_v62, %v28_v1  ;;  %v2115_v6 = vld [vmem:[%s2638_s1 + $0x300] sm:$0xff]  }
  0x3a   :  { %1881 = vmatprep.subr.bf16.mxu1 %v2070_v7  ;;  %v2116_v7 = vld [vmem:[%s2638_s1 + $0x380] sm:$0xff]  }
  0x3c   :  { %1854 = vmatpush3.bf16.msra.mxu0 %v2071_v8  ;;  %v2117_v8 = vld [vmem:[%s2638_s1 + $0x348] sm:$0xff]  }
  0x3d   :  { %1882 = vmatpush3.bf16.msra.mxu1 %v2072_v9  ;;  %1855 = vmatprep.subr.bf16.mxu0 %v2073_v10  ;;  %v2118_v9 = vld [vmem:[%s2638_s1 + $0x3c8] sm:$0xff]  }
  0x3e   :  { %1883 = vmatprep.subr.bf16.mxu1 %v2074_v11  ;;  %v2119_v10 = vld [vmem:[%s2638_s1 + $0x308] sm:$0xff]  }
  0x3f   :  { %v2120_v11 = vld [vmem:[%s2638_s1 + $0x388] sm:$0xff]  }
  0x40   :  { %1856 = vmatpush3.bf16.msra.mxu0 %v2075_v12  ;;  %v35_v12 = vld [vmem:[%s2639_s0 + $0xa0] sm:$0xff] }
  0x41   :  { %1884 = vmatpush3.bf16.msra.mxu1 %v2076_v13  ;;  %1897 = vmatprep.subr.bf16.mxu0 %v2077_v22  ;;  %v1639_v13 = vcombine.high %v35_v12, %v35_v12  ;;  %v1638_v14 = vcombine.low %v35_v12, %v35_v12  ;;  %v2129_v22 = vld [vmem:[%s2638_s1 + $0x358] sm:$0xff]  }
  0x42   :  { %1925 = vmatprep.subr.bf16.mxu1 %v2078_v23  ;;  %v2130_v23 = vld [vmem:[%s2638_s1 + $0x3d8] sm:$0xff]  }
  0x43   :  { %1335 = vmatmul.mubr.bf16.vlgmr.msra.gmra.mrb[8].mxu0 %v1618_v17  ;;  %v36_v17 = vld [vmem:[%s2639_s0 + $0xa8] sm:$0xff] }
  0x44   :  { %1383 = vmatmul.mubr.bf16.vlgmr.msra.gmra.mrb[8].mxu1 %v1620_v20  ;;  %1898 = vmatpush3.bf16.msra.mxu0 %v2079_v24  ;;  %v1641_v18 = vcombine.high %v36_v17, %v36_v17  ;;  %v1640_v20 = vcombine.low %v36_v17, %v36_v17  ;;  %v2131_v24 = vld [vmem:[%s2638_s1 + $0x318] sm:$0xff]  }
  0x45   :  { %1926 = vmatpush3.bf16.msra.mxu1 %v2080_v25  ;;  %1899 = vmatprep.subr.bf16.mxu0 %v2081_v26  ;;  %v2132_v25 = vld [vmem:[%s2638_s1 + $0x398] sm:$0xff]   ;;  %v2133_v26 = vld [vmem:[%s2638_s1 + $0x360] sm:$0xff]  }
  0x46   :  { %1927 = vmatprep.subr.bf16.mxu1 %v2082_v27  ;;  %1342 = vmatprep.mubr.bf16.mxu0 %v1635_v31  ;;  %v2134_v27 = vld [vmem:[%s2638_s1 + $0x3e0] sm:$0xff]   ;;  %v2138_v31 = vld [vmem:[%s2638_s1 + $0x3e8] sm:$0xff]  }
  0x47   :  { %1390 = vmatprep.mubr.bf16.mxu1 %v1637_v36  ;;  %v2143_v36 = vld [vmem:[%s2638_s1 + $0x330] sm:$0xff]  }
  0x48   :  { %1900 = vmatpush3.bf16.msra.mxu0 %v2083_v28  ;;  %v2135_v28 = vld [vmem:[%s2638_s1 + $0x320] sm:$0xff]  }
  0x49   :  { %1928 = vmatpush3.bf16.msra.mxu1 %v2084_v29  ;;  %1901 = vmatprep.subr.bf16.mxu0 %v2087_v33  ;;  %v2136_v29 = vld [vmem:[%s2638_s1 + $0x3a0] sm:$0xff]   ;;  %v2140_v33 = vld [vmem:[%s2638_s1 + $0x3a8] sm:$0xff]  }
  0x4a   :  { %1929 = vmatprep.subr.bf16.mxu1 %v2088_v34  ;;  %v2141_v34 = vld [vmem:[%s2638_s1 + $0x370] sm:$0xff]  }
  0x4b   :  { %1343 = vmatmul.mubr.bf16.gmra.mrb[12].mxu0 %v1634_v32  ;;  %v2139_v32 = vld [vmem:[%s2638_s1 + $0x328] sm:$0xff]  }
  0x4c   :  { %1902 = vmatpush3.bf16.msra.mxu0 %v2090_v37  ;;  %1391 = vmatmul.mubr.bf16.gmra.mrb[12].mxu1 %v1636_v38  ;;  %v2144_v37 = vld [vmem:[%s2638_s1 + $0x3b0] sm:$0xff]   ;;  %v2145_v38 = vld [vmem:[%s2638_s1 + $0x378] sm:$0xff]  }
  0x4d   :  { %1930 = vmatpush3.bf16.msra.mxu1 %v2091_v39  ;;  %1903 = vmatprep.subr.bf16.mxu0 %v2093_v40  ;;  %v2146_v39 = vld [vmem:[%s2638_s1 + $0x3f8] sm:$0xff]  }
  0x4e   :  { %1931 = vmatprep.subr.bf16.mxu1 %v2094_v41  ;;  %1430 = vmatprep.mubr.bf16.mxu0 %v1623_v0  ;;  %v2147_v40 = vld [vmem:[%s2638_s1 + $0x338] sm:$0xff]  }
  0x4f   :  { %1478 = vmatprep.mubr.bf16.mxu1 %v1625_v3  ;;  %v2148_v41 = vld [vmem:[%s2638_s1 + $0x3b8] sm:$0xff]  }
  0x50   :  { %1904 = vmatpush3.bf16.msra.mxu0 %v2095_v42  ;;  %v21_v42 = vld [vmem:[%s2639_s0 + $0x30] sm:$0xff] }
  0x51   :  { %1932 = vmatpush3.bf16.msra.mxu1 %v2096_v43  ;;  %1905 = vmatprep.subr.bf16.mxu0 %v2097_v44  ;;  %v29_v43 = vld [vmem:[%s2639_s0 + $0x70] sm:$0xff]  ;;  %v22_v44 = vld [vmem:[%s2639_s0 + $0x38] sm:$0xff] }
  0x52   :  { %1933 = vmatprep.subr.bf16.mxu1 %v2098_v45  ;;  %v1626_v45 = vcombine.low %v21_v42, %v29_v43 }
  0x54   :  { %1906 = vmatpush3.bf16.msra.mxu0 %v2099_v46  ;;  %v1627_v46 = vcombine.high %v21_v42, %v29_v43 }
  0x55   :  { %1934 = vmatpush3.bf16.msra.mxu1 %v2100_v47  ;;  %1907 = vmatprep.subr.bf16.mxu0 %v2101_v48  ;;  %v30_v47 = vld [vmem:[%s2639_s0 + $0x78] sm:$0xff]  ;;  %v37_v48 = vld [vmem:[%s2639_s0 + $0xb0] sm:$0xff] }
  0x56   :  { %1935 = vmatprep.subr.bf16.mxu1 %v2102_v49  ;;  %v38_v49 = vld [vmem:[%s2639_s0 + $0xb8] sm:$0xff] }
  0x58   :  { %1908 = vmatpush3.bf16.msra.mxu0 %v2103_v50  ;;  %v1628_v50 = vcombine.low %v22_v44, %v30_v47 }
  0x59   :  { %1936 = vmatpush3.bf16.msra.mxu1 %v2104_v51  ;;  %1909 = vmatprep.subr.bf16.mxu0 %v2105_v52  ;;  %v1629_v51 = vcombine.high %v22_v44, %v30_v47  ;;  %v1643_v52 = vcombine.high %v37_v48, %v37_v48 }
  0x5a   :  { %1937 = vmatprep.subr.bf16.mxu1 %v2106_v53  ;;  %v1645_v53 = vcombine.high %v38_v49, %v38_v49 }
  0x5c   :  { %1910 = vmatpush3.bf16.msra.mxu0 %v2107_v54  ;;  %v1642_v54 = vcombine.low %v37_v48, %v37_v48 }
  0x5d   :  { %1938 = vmatpush3.bf16.msra.mxu1 %v2108_v55  ;;  %1911 = vmatprep.subr.bf16.mxu0 %v2109_v56  ;;  %v1644_v55 = vcombine.low %v38_v49, %v38_v49 }
  0x5e   :  { %1939 = vmatprep.subr.bf16.mxu1 %v2110_v57 }
  0x60   :  { %1912 = vmatpush3.bf16.msra.mxu0 %v2111_v58  ;;  %v1613_v58 = vld [vmem:[%s2640_s2] ss:$0 sm:$0xff] }
  0x61   :  { %1940 = vmatpush3.bf16.msra.mxu1 %v2112_v59  ;;  %1953 = vmatprep.subr.bf16.mxu0 %v2113_v4 }
  0x62   :  { %1981 = vmatprep.subr.bf16.mxu1 %v2114_v5 }
  0x63   :  { %1431 = vmatmul.mubr.bf16.vlgmr.msra.gmra.mrb[16].mxu0 %v1622_v63 }
  0x64   :  { %1479 = vmatmul.mubr.bf16.vlgmr.msra.gmra.mrb[16].mxu1 %v1624_v2  ;;  %1954 = vmatpush3.bf16.msra.mxu0 %v2115_v6 }
  0x65   :  { %1982 = vmatpush3.bf16.msra.mxu1 %v2116_v7  ;;  %1955 = vmatprep.subr.bf16.mxu0 %v2117_v8 }
  0x66   :  { %1983 = vmatprep.subr.bf16.mxu1 %v2118_v9  ;;  %1438 = vmatprep.mubr.bf16.mxu0 %v1639_v13 }
  0x67   :  { %1486 = vmatprep.mubr.bf16.mxu1 %v1641_v18 }
  0x68   :  { %1956 = vmatpush3.bf16.msra.mxu0 %v2119_v10 }
  0x69   :  { %1984 = vmatpush3.bf16.msra.mxu1 %v2120_v11  ;;  %1957 = vmatprep.subr.bf16.mxu0 %v2123_v15 }
  0x6a   :  { %1985 = vmatprep.subr.bf16.mxu1 %v2124_v16 }
  0x6b   :  { %1439 = vmatmul.mubr.bf16.gmra.mrb[20].mxu0 %v1638_v14 }
  0x6c   :  { %1958 = vmatpush3.bf16.msra.mxu0 %v2126_v19  ;;  %1487 = vmatmul.mubr.bf16.gmra.mrb[20].mxu1 %v1640_v20 }
  0x6d   :  { %1986 = vmatpush3.bf16.msra.mxu1 %v2127_v21  ;;  %1959 = vmatprep.subr.bf16.mxu0 %v2129_v22 }
  0x6e   :  { %1987 = vmatprep.subr.bf16.mxu1 %v2130_v23  ;;  %1526 = vmatprep.mubr.bf16.mxu0 %v1627_v46 }
  0x6f   :  { %1574 = vmatprep.mubr.bf16.mxu1 %v1629_v51 }
  0x70   :  { %1960 = vmatpush3.bf16.msra.mxu0 %v2131_v24 }
  0x71   :  { %1988 = vmatpush3.bf16.msra.mxu1 %v2132_v25  ;;  %1961 = vmatprep.subr.bf16.mxu0 %v2133_v26 }
  0x72   :  { %1989 = vmatprep.subr.bf16.mxu1 %v2134_v27 }
  0x74   :  { %1962 = vmatpush3.bf16.msra.mxu0 %v2135_v28 }
  0x75   :  { %1990 = vmatpush3.bf16.msra.mxu1 %v2136_v29  ;;  %1963 = vmatprep.subr.bf16.mxu0 %v2137_v30 }
  0x76   :  { %1991 = vmatprep.subr.bf16.mxu1 %v2138_v31 }
  0x78   :  { %1964 = vmatpush3.bf16.msra.mxu0 %v2139_v32 }
  0x79   :  { %1992 = vmatpush3.bf16.msra.mxu1 %v2140_v33  ;;  %1965 = vmatprep.subr.bf16.mxu0 %v2141_v34 }
  0x7a   :  { %1993 = vmatprep.subr.bf16.mxu1 %v2142_v35 }
  0x7c   :  { %1966 = vmatpush3.bf16.msra.mxu0 %v2143_v36 }
  0x7d   :  { %1994 = vmatpush3.bf16.msra.mxu1 %v2144_v37  ;;  %1967 = vmatprep.subr.bf16.mxu0 %v2145_v38 }
  0x7e   :  { %1995 = vmatprep.subr.bf16.mxu1 %v2146_v39 }
  0x80   :  { %1968 = vmatpush3.bf16.msra.mxu0 %v2147_v40 }
  0x81   :  { %1996 = vmatpush3.bf16.msra.mxu1 %v2148_v41 }
  0x83   :  { %1527 = vmatmul.mubr.bf16.vlgmr.msra.gmra.mrb[24].mxu0 %v1626_v45 }
  0x84   :  { %1575 = vmatmul.mubr.bf16.vlgmr.msra.gmra.mrb[24].mxu1 %v1628_v50  ;;  %1534 = vmatprep.mubr.bf16.mxu0 %v1643_v52 }
  0x85   :  { %1582 = vmatprep.mubr.bf16.mxu1 %v1645_v53 }
  0x8b   :  { %1535 = vmatmul.mubr.bf16.gmra.mrb[28].mxu0 %v1642_v54 }
  0x8c   :  { %1583 = vmatmul.mubr.bf16.gmra.mrb[28].mxu1 %v1644_v55 }
  0xf6   :  { %v1801_v56 = vpop.f32.mrb[0].mxu0 }
  0xf7   :  { %v1829_v57 = vpop.f32.mrb[0].mxu1  ;;  %v1802_v59 = vpop.f32.mrb[1].mxu0 }
  0xf8   :  { %v1803_v60 = vadd.f32 %v1802_v59, %v1801_v56  ;;  %v1830_v61 = vpop.f32.mrb[1].mxu1  ;;  %v1804_v62 = vpop.f32.mrb[2].mxu0 }
  0xf9   :  { %v1831_v63 = vadd.f32 %v1830_v61, %v1829_v57  ;;  %v1832_v0 = vpop.f32.mrb[2].mxu1  ;;  %v1805_v1 = vpop.f32.mrb[3].mxu0 }
  0xfa   :  { %v1241_v2 = vadd.f32 %v1803_v60, %v1613_v58  ;;  %v1806_v3 = vadd.f32 %v1805_v1, %v1804_v62  ;;  %v1833_v4 = vpop.f32.mrb[3].mxu1 }
  0xfb   :  { %v1834_v5 = vadd.f32 %v1833_v4, %v1832_v0 }
  0xfc   :  { %v1289_v6 = vadd.f32 %v1831_v63, %v1241_v2  ;;  %v1244_v7 = vadd.f32 %v1806_v3, %v1613_v58 }
  0xfe   :  { %v1292_v8 = vadd.f32 %v1834_v5, %v1244_v7  ;;  %v1807_v9 = vpop.f32.mrb[4].mxu0 }
  0xff   :  { %v1808_v10 = vpop.f32.mrb[5].mxu0  ;;  %v1835_v13 = vpop.f32.mrb[4].mxu1 }
 0x100   :  { %v1809_v11 = vadd.f32 %v1808_v10, %v1807_v9  ;;  %v1810_v12 = vpop.f32.mrb[6].mxu0  ;;  %v1836_v15 = vpop.f32.mrb[5].mxu1 }
 0x101   :  { %v1811_v14 = vpop.f32.mrb[7].mxu0  ;;  %v1837_v17 = vadd.f32 %v1836_v15, %v1835_v13  ;;  %v1838_v18 = vpop.f32.mrb[6].mxu1 }
 0x102   :  { %v1249_v16 = vadd.f32 %v1809_v11, %v1613_v58  ;;  %v1839_v19 = vpop.f32.mrb[7].mxu1 }
 0x104   :  { %v1297_v20 = vadd.f32 %v1837_v17, %v1249_v16 }
 0x116   :  { %v1857_v21 = vpop.f32.mrb[8].mxu0 }
 0x117   :  { %v1885_v22 = vpop.f32.mrb[8].mxu1  ;;  %v1858_v23 = vpop.f32.mrb[9].mxu0 }
 0x118   :  { %v1859_v24 = vadd.f32 %v1858_v23, %v1857_v21  ;;  %v1886_v25 = vpop.f32.mrb[9].mxu1  ;;  %v1860_v26 = vpop.f32.mrb[10].mxu0 }
 0x119   :  { %v1887_v27 = vadd.f32 %v1886_v25, %v1885_v22  ;;  %v1888_v28 = vpop.f32.mrb[10].mxu1  ;;  %v1861_v29 = vpop.f32.mrb[11].mxu0 }
 0x11a   :  { %v1337_v30 = vadd.f32 %v1859_v24, %v1289_v6  ;;  %v1862_v31 = vadd.f32 %v1861_v29, %v1860_v26  ;;  %v1889_v32 = vpop.f32.mrb[11].mxu1 }
 0x11b   :  { %v1890_v33 = vadd.f32 %v1889_v32, %v1888_v28 }
 0x11c   :  { %v1385_v34 = vadd.f32 %v1887_v27, %v1337_v30  ;;  %v1340_v35 = vadd.f32 %v1862_v31, %v1292_v8 }
 0x11e   :  { %v1388_v36 = vadd.f32 %v1890_v33, %v1340_v35  ;;  %v1863_v37 = vpop.f32.mrb[12].mxu0 }
 0x11f   :  { %v1864_v38 = vpop.f32.mrb[13].mxu0  ;;  %v1891_v41 = vpop.f32.mrb[12].mxu1 }
 0x120   :  { %v1865_v39 = vadd.f32 %v1864_v38, %v1863_v37  ;;  %v1866_v40 = vpop.f32.mrb[14].mxu0  ;;  %v1892_v44 = vpop.f32.mrb[13].mxu1 }
 0x121   :  { %v1867_v42 = vpop.f32.mrb[15].mxu0  ;;  %v1893_v45 = vadd.f32 %v1892_v44, %v1891_v41  ;;  %v1894_v46 = vpop.f32.mrb[14].mxu1 }
 0x122   :  { %v1345_v43 = vadd.f32 %v1865_v39, %v1297_v20  ;;  %v1895_v47 = vpop.f32.mrb[15].mxu1 }
 0x124   :  { %v1393_v48 = vadd.f32 %v1893_v45, %v1345_v43 }
 0x136   :  { %v1913_v49 = vpop.f32.mrb[16].mxu0 }
 0x137   :  { %v1941_v50 = vpop.f32.mrb[16].mxu1  ;;  %v1914_v51 = vpop.f32.mrb[17].mxu0 }
 0x138   :  { %v1915_v52 = vadd.f32 %v1914_v51, %v1913_v49  ;;  %v1942_v53 = vpop.f32.mrb[17].mxu1  ;;  %v1916_v54 = vpop.f32.mrb[18].mxu0 }
 0x139   :  { %v1943_v55 = vadd.f32 %v1942_v53, %v1941_v50  ;;  %v1944_v56 = vpop.f32.mrb[18].mxu1  ;;  %v1917_v57 = vpop.f32.mrb[19].mxu0 }
 0x13a   :  { %v1433_v58 = vadd.f32 %v1915_v52, %v1385_v34  ;;  %v1918_v59 = vadd.f32 %v1917_v57, %v1916_v54  ;;  %v1945_v60 = vpop.f32.mrb[19].mxu1 }
 0x13b   :  { %v1946_v61 = vadd.f32 %v1945_v60, %v1944_v56 }
 0x13c   :  { %v1481_v62 = vadd.f32 %v1943_v55, %v1433_v58  ;;  %v1436_v63 = vadd.f32 %v1918_v59, %v1388_v36 }
 0x13e   :  { %v1484_v0 = vadd.f32 %v1946_v61, %v1436_v63  ;;  %v1919_v1 = vpop.f32.mrb[20].mxu0 }
 0x13f   :  { %v1920_v2 = vpop.f32.mrb[21].mxu0  ;;  %v1947_v5 = vpop.f32.mrb[20].mxu1 }
 0x140   :  { %v1921_v3 = vadd.f32 %v1920_v2, %v1919_v1  ;;  %v1922_v4 = vpop.f32.mrb[22].mxu0  ;;  %v1948_v8 = vpop.f32.mrb[21].mxu1 }
 0x141   :  { %v1923_v6 = vpop.f32.mrb[23].mxu0  ;;  %v1949_v9 = vadd.f32 %v1948_v8, %v1947_v5  ;;  %v1950_v10 = vpop.f32.mrb[22].mxu1 }
 0x142   :  { %v1441_v7 = vadd.f32 %v1921_v3, %v1393_v48  ;;  %v1951_v11 = vpop.f32.mrb[23].mxu1 }
 0x144   :  { %v1489_v12 = vadd.f32 %v1949_v9, %v1441_v7 }
 0x156   :  { %v1969_v13 = vpop.f32.mrb[24].mxu0 }
 0x157   :  { %v1997_v14 = vpop.f32.mrb[24].mxu1  ;;  %v1970_v15 = vpop.f32.mrb[25].mxu0 }
 0x158   :  { %v1971_v16 = vadd.f32 %v1970_v15, %v1969_v13  ;;  %v1998_v17 = vpop.f32.mrb[25].mxu1  ;;  %v1972_v18 = vpop.f32.mrb[26].mxu0 }
 0x159   :  { %v1999_v19 = vadd.f32 %v1998_v17, %v1997_v14  ;;  %v2000_v20 = vpop.f32.mrb[26].mxu1  ;;  %v1973_v21 = vpop.f32.mrb[27].mxu0 }
 0x15a   :  { %v1529_v22 = vadd.f32 %v1971_v16, %v1481_v62  ;;  %v1974_v23 = vadd.f32 %v1973_v21, %v1972_v18  ;;  %v2001_v24 = vpop.f32.mrb[27].mxu1 }
 0x15b   :  { %v2002_v25 = vadd.f32 %v2001_v24, %v2000_v20 }
 0x15c   :  { %v1577_v26 = vadd.f32 %v1999_v19, %v1529_v22  ;;  %v1532_v27 = vadd.f32 %v1974_v23, %v1484_v0 }
 0x15e   :  { %v1580_v28 = vadd.f32 %v2002_v25, %v1532_v27  ;;  %v1975_v29 = vpop.f32.mrb[28].mxu0  ;;  %v1590_v32 = vmax.f32 %v1577_v26, 0.0 }
 0x15f   :  { %v2003_v30 = vpop.f32.mrb[28].mxu1  ;;  %v1976_v31 = vpop.f32.mrb[29].mxu0 }
 0x160   :  { %v1591_v33 = vmax.f32 %v1580_v28, 0.0  ;;  %v1977_v34 = vadd.f32 %v1976_v31, %v1975_v29  ;;  %v2004_v35 = vpop.f32.mrb[29].mxu1  ;;  %v1978_v36 = vpop.f32.mrb[30].mxu0 }
 0x161   :  { %v2005_v37 = vadd.f32 %v2004_v35, %v2003_v30  ;;  %v2006_v38 = vpop.f32.mrb[30].mxu1  ;;  %v1979_v39 = vpop.f32.mrb[31].mxu0 }
 0x162   :  { %v1783_v40 = vpack.c.bf16 %v1591_v33, %v1590_v32  ;;  %v1537_v41 = vadd.f32 %v1977_v34, %v1489_v12  ;;  %v2007_v42 = vpop.f32.mrb[31].mxu1 }
 0x164   :  { %v1585_v43 = vadd.f32 %v2005_v37, %v1537_v41  ;;  %1784 = vst [vmem:[%s2641_s3] sm:$0xff] %v1783_v40  }
 0x166   :  { %v1592_v44 = vmax.f32 %v1585_v43, 0.0 }
 0x168   :  { %v1779_v45 = vpack.c.bf16 %v1592_v44, %v1592_v44 }
 0x16a   :  { %1608 = vst [vmem:[%s2641_s3 + $0x8] sm:$0xf] %v1779_v45 }

</bundles_post_ra>
